<compile_context>
chip_gen: v7x
topology: tpu7x:2x2x1
jax: 0.10.0
libtpu: 0.0.40
codegen_flags: <defaults>
</compile_context>

<pallas_src>
import math
import functools

import jax
import jax.numpy as jnp
from jax.experimental import pallas as pl
from jax.experimental.pallas import tpu as pltpu  # noqa: F401  (TPU backend assumed)

F32 = jnp.float32
BF16 = jnp.bfloat16
NEG_INF = -1e30  # finite stand-in for -inf in the additive attention mask


# ----------------------------------------------------------------------------
# BlockSpec helper: whole array as one block (tiny shapes fit VMEM comfortably)
# ----------------------------------------------------------------------------
def _spec(shape):
    nd = len(shape)
    return pl.BlockSpec(shape, lambda i, nd=nd: (0,) * nd)


# ----------------------------------------------------------------------------
# Pallas kernels
# ----------------------------------------------------------------------------
def _linear_kernel(x_ref, w_ref, b_ref, o_ref):
    # o = x @ w + b   (bf16 MXU inputs, f32 accumulation / epilogue)
    o_ref[...] = (
        jnp.dot(x_ref[...].astype(BF16), w_ref[...].astype(BF16),
                preferred_element_type=jnp.float32)
        + b_ref[...]
    )


def _proj_add_ln_kernel(a_ref, res_ref, w_ref, b_ref, g_ref, bt_ref, o_ref):
    # y = a @ w + b ; o = LayerNorm(res + y)   (eps = 1e-5, PyTorch default)
    y = (
        jnp.dot(a_ref[...].astype(BF16), w_ref[...].astype(BF16),
                preferred_element_type=jnp.float32)
        + b_ref[...]
    )
    x = res_ref[...] + y
    mu = jnp.mean(x, axis=-1, keepdims=True)
    var = jnp.mean(jnp.square(x - mu), axis=-1, keepdims=True)
    o_ref[...] = (x - mu) * jax.lax.rsqrt(var + 1e-5) * g_ref[...] + bt_ref[...]


def _ffn_ln_kernel(x_ref, w1_ref, b1_ref, w2_ref, b2_ref, g_ref, bt_ref, o_ref):
    # h = relu(x @ w1 + b1) ; y = h @ w2 + b2 ; o = LayerNorm(x + y)
    x = x_ref[...]
    h = (
        jnp.dot(x.astype(BF16), w1_ref[...].astype(BF16),
                preferred_element_type=jnp.float32)
        + b1_ref[...]
    )
    h = jnp.maximum(h, 0.0)
    y = (
        jnp.dot(h.astype(BF16), w2_ref[...].astype(BF16),
                preferred_element_type=jnp.float32)
        + b2_ref[...]
    )
    z = x + y
    mu = jnp.mean(z, axis=-1, keepdims=True)
    var = jnp.mean(jnp.square(z - mu), axis=-1, keepdims=True)
    o_ref[...] = (z - mu) * jax.lax.rsqrt(var + 1e-5) * g_ref[...] + bt_ref[...]


def _layernorm_kernel(x_ref, g_ref, b_ref, o_ref):
    x = x_ref[...]
    mu = jnp.mean(x, axis=-1, keepdims=True)
    var = jnp.mean(jnp.square(x - mu), axis=-1, keepdims=True)
    o_ref[...] = (x - mu) * jax.lax.rsqrt(var + 1e-5) * g_ref[...] + b_ref[...]


def _mha_kernel(q_ref, k_ref, v_ref, o_ref, *, scale, causal):
    # q:(BH,Sq,Dh) k,v:(BH,Sk,Dh) -> o:(BH,Sq,Dh)
    # Scores on the MXU in bf16, softmax in f32, approx reciprocal on the EUP.
    q = q_ref[...].astype(BF16)
    k = k_ref[...].astype(BF16)
    s = jnp.einsum("bqd,bkd->bqk", q, k, preferred_element_type=jnp.float32)
    s = s * scale
    if causal:
        Sq, Sk = s.shape[1], s.shape[2]
        qi = jax.lax.broadcasted_iota(jnp.int32, (Sq, Sk), 0)
        ki = jax.lax.broadcasted_iota(jnp.int32, (Sq, Sk), 1)
        mask = jnp.where(ki <= qi, 0.0, NEG_INF).astype(jnp.float32)
        s = s + mask[None, :, :]
    mx = jnp.max(s, axis=-1, keepdims=True)
    p = jnp.exp(s - mx)
    denom = jnp.sum(p, axis=-1, keepdims=True)
    o = jnp.einsum("bqk,bkd->bqd", p.astype(BF16), v_ref[...].astype(BF16),
                   preferred_element_type=jnp.float32)
    o_ref[...] = o * pl.reciprocal(denom, approx=True)


def _posenc_kernel(x_ref, pe_ref, o_ref, *, scale):
    # x * sqrt(d_model) + pe ; pe is (S,1,E) and broadcast in-kernel over B.
    o_ref[...] = x_ref[...] * scale + pe_ref[...]


# ----------------------------------------------------------------------------
# Pallas wrappers
# ----------------------------------------------------------------------------
def pallas_linear(x, w, b):
    M, K = x.shape
    N = w.shape[1]
    return pl.pallas_call(
        _linear_kernel,
        out_shape=jax.ShapeDtypeStruct((M, N), F32),
        grid=(1,),
        in_specs=[_spec((M, K)), _spec((K, N)), _spec((1, N))],
        out_specs=_spec((M, N)),
    )(x, w, b.reshape(1, N))


def pallas_proj_add_ln(a, res, w, b, g, beta):
    M, K = a.shape
    N = w.shape[1]
    return pl.pallas_call(
        _proj_add_ln_kernel,
        out_shape=jax.ShapeDtypeStruct((M, N), F32),
        grid=(1,),
        in_specs=[_spec((M, K)), _spec((M, N)), _spec((K, N)),
                  _spec((1, N)), _spec((1, N)), _spec((1, N))],
        out_specs=_spec((M, N)),
    )(a, res, w, b.reshape(1, N), g.reshape(1, N), beta.reshape(1, N))


def pallas_ffn_ln(x, w1, b1, w2, b2, g, beta):
    M, E = x.shape
    Fh = w1.shape[1]
    return pl.pallas_call(
        _ffn_ln_kernel,
        out_shape=jax.ShapeDtypeStruct((M, E), F32),
        grid=(1,),
        in_specs=[_spec((M, E)), _spec((E, Fh)), _spec((1, Fh)),
                  _spec((Fh, E)), _spec((1, E)), _spec((1, E)), _spec((1, E))],
        out_specs=_spec((M, E)),
    )(x, w1, b1.reshape(1, Fh), w2, b2.reshape(1, E),
      g.reshape(1, E), beta.reshape(1, E))


def pallas_layernorm(x, g, beta):
    M, E = x.shape
    return pl.pallas_call(
        _layernorm_kernel,
        out_shape=jax.ShapeDtypeStruct((M, E), F32),
        grid=(1,),
        in_specs=[_spec((M, E)), _spec((1, E)), _spec((1, E))],
        out_specs=_spec((M, E)),
    )(x, g.reshape(1, E), beta.reshape(1, E))


def pallas_mha_core(q, k, v, scale, causal):
    BH, Sq, Dh = q.shape
    Sk = k.shape[1]
    return pl.pallas_call(
        functools.partial(_mha_kernel, scale=scale, causal=causal),
        out_shape=jax.ShapeDtypeStruct((BH, Sq, Dh), F32),
        grid=(1,),
        in_specs=[_spec((BH, Sq, Dh)), _spec((BH, Sk, Dh)), _spec((BH, Sk, Dh))],
        out_specs=_spec((BH, Sq, Dh)),
    )(q, k, v)


def pallas_posenc(x, pe_slice, scale):
    S, B, E = x.shape
    pe3 = pe_slice[:, None, :]  # (S,1,E); broadcast happens inside the kernel
    return pl.pallas_call(
        functools.partial(_posenc_kernel, scale=scale),
        out_shape=jax.ShapeDtypeStruct((S, B, E), F32),
        grid=(1,),
        in_specs=[_spec((S, B, E)), _spec((S, 1, E))],
        out_specs=_spec((S, B, E)),
    )(x, pe3)


# ----------------------------------------------------------------------------
# Model pieces (PyTorch nn.TransformerEncoder/DecoderLayer semantics, post-norm)
# ----------------------------------------------------------------------------
def self_attention_core(x, p, nhead, causal):
    # Returns the per-head attention output (pre out-projection) as (S*B, E).
    S, B, E = x.shape
    Dh = E // nhead
    x2 = x.reshape(S * B, E)
    qkv = pallas_linear(x2, p["w_qkv"], p["b_qkv"])          # fused QKV matmul
    q, k, v = jnp.split(qkv, 3, axis=1)
    q = q.reshape(S, B * nhead, Dh).transpose(1, 0, 2)
    k = k.reshape(S, B * nhead, Dh).transpose(1, 0, 2)
    v = v.reshape(S, B * nhead, Dh).transpose(1, 0, 2)
    attn = pallas_mha_core(q, k, v, 1.0 / math.sqrt(Dh), causal)
    return attn.transpose(1, 0, 2).reshape(S * B, E)


def cross_attention_core(x, memory, p, nhead):
    S, B, E = x.shape
    Sm = memory.shape[0]
    Dh = E // nhead
    q = pallas_linear(x.reshape(S * B, E), p["w_q"], p["b_q"])
    kv = pallas_linear(memory.reshape(Sm * B, E), p["w_kv"], p["b_kv"])  # fused K|V
    k, v = jnp.split(kv, 2, axis=1)
    q = q.reshape(S, B * nhead, Dh).transpose(1, 0, 2)
    k = k.reshape(Sm, B * nhead, Dh).transpose(1, 0, 2)
    v = v.reshape(Sm, B * nhead, Dh).transpose(1, 0, 2)
    attn = pallas_mha_core(q, k, v, 1.0 / math.sqrt(Dh), causal=False)
    return attn.transpose(1, 0, 2).reshape(S * B, E)


def encoder_layer(x, p, nhead):
    S, B, E = x.shape
    x2 = x.reshape(S * B, E)
    a = self_attention_core(x, p["self_attn"], nhead, causal=False)
    x2 = pallas_proj_add_ln(a, x2, p["self_attn"]["w_o"], p["self_attn"]["b_o"],
                            p["ln1_g"], p["ln1_b"])
    x2 = pallas_ffn_ln(x2, p["ff1_w"], p["ff1_b"], p["ff2_w"], p["ff2_b"],
                       p["ln2_g"], p["ln2_b"])
    return x2.reshape(S, B, E)


def decoder_layer(x, memory, p, nhead):
    S, B, E = x.shape
    x2 = x.reshape(S * B, E)
    a = self_attention_core(x, p["self_attn"], nhead, causal=True)
    x2 = pallas_proj_add_ln(a, x2, p["self_attn"]["w_o"], p["self_attn"]["b_o"],
                            p["ln1_g"], p["ln1_b"])
    c = cross_attention_core(x2.reshape(S, B, E), memory, p["cross_attn"], nhead)
    x2 = pallas_proj_add_ln(c, x2, p["cross_attn"]["w_o"], p["cross_attn"]["b_o"],
                            p["ln2_g"], p["ln2_b"])
    x2 = pallas_ffn_ln(x2, p["ff1_w"], p["ff1_b"], p["ff2_w"], p["ff2_b"],
                       p["ln3_g"], p["ln3_b"])
    return x2.reshape(S, B, E)


def transformer_forward(params, src_tokens, tgt_tokens, *, nhead, tgt_vocab):
    S_s, B = src_tokens.shape
    S_t, _ = tgt_tokens.shape
    E = params["src_emb"].shape[1]
    scale = math.sqrt(E)

    # ----- source embedding + positional encoding -----
    src = params["src_emb"][src_tokens]                      # (S_s, B, E) gather (XLA)
    src = pallas_posenc(src, params["pe"][:S_s], scale)

    # ----- encoder (self-attn has no mask: causal=False) -----
    x = src
    for lp in params["enc_layers"]:
        x = encoder_layer(x, lp, nhead)
    g, b = params["enc_norm"]
    memory = pallas_layernorm(x.reshape(S_s * B, E), g, b).reshape(S_s, B, E)

    # ----- target embedding + positional encoding -----
    tgt = params["tgt_emb"][tgt_tokens]
    tgt = pallas_posenc(tgt, params["pe"][:S_t], scale)

    # ----- decoder (causal self-attn mask generated inside the MHA kernel) -----
    y = tgt
    for lp in params["dec_layers"]:
        y = decoder_layer(y, memory, lp, nhead)
    g, b = params["dec_norm"]
    y2 = pallas_layernorm(y.reshape(S_t * B, E), g, b)

    # ----- output projection (vocab padded to a lane-dense multiple of 128) -----
    logits_pad = pallas_linear(y2, params["out_w"], params["out_b"])
    logits = logits_pad[:, :tgt_vocab]
    return logits.reshape(S_t, B, tgt_vocab)


# ----------------------------------------------------------------------------
# Deterministic parameter init (xavier_uniform on >1-D params, as in the module)
# ----------------------------------------------------------------------------
def make_pe(max_len, d_model):
    position = jnp.arange(max_len, dtype=F32)[:, None]
    div_term = jnp.exp(
        jnp.arange(0, d_model, 2, dtype=F32) * (-math.log(10000.0) / d_model)
    )
    pe = jnp.zeros((max_len, d_model), F32)
    pe = pe.at[:, 0::2].set(jnp.sin(position * div_term))
    pe = pe.at[:, 1::2].set(jnp.cos(position * div_term))
    return pe  # (max_len, d_model)


def init_params(key, d_model, nhead, n_enc, n_dec, d_ff, src_vocab, tgt_vocab, max_len):
    keys = iter(jax.random.split(key, 256))

    def xav(shape):  # torch convention: shape = (fan_out, fan_in)
        fan_out, fan_in = shape
        lim = math.sqrt(6.0 / (fan_in + fan_out))
        return jax.random.uniform(next(keys), shape, F32, -lim, lim)

    def self_attn_params():
        in_proj = xav((3 * d_model, d_model))   # matches MHA in_proj_weight xavier
        return dict(
            w_qkv=in_proj.T,                                    # (E, 3E) = [Wq|Wk|Wv]
            b_qkv=jnp.zeros((3 * d_model,), F32),
            w_o=xav((d_model, d_model)).T, b_o=jnp.zeros((d_model,), F32),
        )

    def cross_attn_params():
        in_proj = xav((3 * d_model, d_model))
        return dict(
            w_q=in_proj[:d_model].T, b_q=jnp.zeros((d_model,), F32),
            w_kv=in_proj[d_model:].T, b_kv=jnp.zeros((2 * d_model,), F32),
            w_o=xav((d_model, d_model)).T, b_o=jnp.zeros((d_model,), F32),
        )

    def ln():
        return jnp.ones((d_model,), F32), jnp.zeros((d_model,), F32)

    def ffn():
        return dict(
            ff1_w=xav((d_ff, d_model)).T, ff1_b=jnp.zeros((d_ff,), F32),
            ff2_w=xav((d_model, d_ff)).T, ff2_b=jnp.zeros((d_model,), F32),
        )

    def enc_layer():
        g1, b1 = ln(); g2, b2 = ln()
        d = dict(self_attn=self_attn_params(), ln1_g=g1, ln1_b=b1, ln2_g=g2, ln2_b=b2)
        d.update(ffn())
        return d

    def dec_layer():
        g1, b1 = ln(); g2, b2 = ln(); g3, b3 = ln()
        d = dict(
            self_attn=self_attn_params(), cross_attn=cross_attn_params(),
            ln1_g=g1, ln1_b=b1, ln2_g=g2, ln2_b=b2, ln3_g=g3, ln3_b=b3,
        )
        d.update(ffn())
        return d

    # Pad vocab projection columns to a multiple of 128 (lane-dense store);
    # padded columns are zero and are sliced off in the wrapper.
    v_pad = ((tgt_vocab + 127) // 128) * 128
    out_w = jnp.zeros((d_model, v_pad), F32).at[:, :tgt_vocab].set(
        xav((tgt_vocab, d_model)).T
    )
    out_b = jnp.zeros((v_pad,), F32)

    return dict(
        src_emb=xav((src_vocab, d_model)),
        tgt_emb=xav((tgt_vocab, d_model)),
        pe=make_pe(max_len, d_model),
        enc_layers=[enc_layer() for _ in range(n_enc)],
        enc_norm=ln(),
        dec_layers=[dec_layer() for _ in range(n_dec)],
        dec_norm=ln(),
        out_w=out_w,
        out_b=out_b,
    )


# ----------------------------------------------------------------------------
if __name__ == "__main__":
    # Small, shape-consistent configuration of MyTransformer
    D_MODEL, NHEAD = 32, 4
    N_ENC, N_DEC = 2, 2
    D_FF = 64
    SRC_VOCAB, TGT_VOCAB = 100, 100
    MAX_LEN = 16
    S_SRC, S_TGT, B = 8, 8, 2

    key = jax.random.PRNGKey(0)
    pkey, skey, tkey = jax.random.split(key, 3)

    params = init_params(
        pkey, D_MODEL, NHEAD, N_ENC, N_DEC, D_FF, SRC_VOCAB, TGT_VOCAB, MAX_LEN
    )
    src_tokens = jax.random.randint(skey, (S_SRC, B), 0, SRC_VOCAB, dtype=jnp.int32)
    tgt_tokens = jax.random.randint(tkey, (S_TGT, B), 0, TGT_VOCAB, dtype=jnp.int32)

    fwd = jax.jit(
        functools.partial(transformer_forward, nhead=NHEAD, tgt_vocab=TGT_VOCAB)
    )
    logits = fwd(params, src_tokens, tgt_tokens)
    jax.block_until_ready(logits)

    assert logits.shape == (S_TGT, B, TGT_VOCAB), logits.shape
    assert bool(jnp.all(jnp.isfinite(logits)))
    print("KERNEL_OK")
</pallas_src>

<mosaic_0001>
module attributes {stable_mosaic.version = 11 : i64} {
  func.func @_posenc_kernel(%arg0: i32, %arg1: memref<8x2x32xf32, #tpu.memory_space<vmem>>, %arg2: memref<8x1x32xf32, #tpu.memory_space<vmem>>, %arg3: memref<8x2x32xf32, #tpu.memory_space<vmem>>) attributes {dimension_semantics = [#tpu.dimension_semantics<arbitrary>], iteration_bounds = array<i64: 1>, scalar_prefetch = 0 : i64, scratch_operands = 0 : i64, tpu.core_type = #tpu.core_type<tc>, window_params = [{pipeline_mode = #tpu.pipeline_mode<synchronous>, transform_indices = @transform_0, window_bounds = array<i64: 8, 2, 32>}, {pipeline_mode = #tpu.pipeline_mode<synchronous>, transform_indices = @transform_1, window_bounds = array<i64: 8, 1, 32>}, {pipeline_mode = #tpu.pipeline_mode<synchronous>, transform_indices = @transform_2, window_bounds = array<i64: 8, 2, 32>}]} {
    %c0 = arith.constant 0 : index
    %c0_0 = arith.constant 0 : index
    %c0_1 = arith.constant 0 : index
    %0 = vector.load %arg1[%c0, %c0_0, %c0_1] : memref<8x2x32xf32, #tpu.memory_space<vmem>>, vector<8x2x32xf32>
    %cst = arith.constant 5.65685415 : f32
    %1 = vector.broadcast %cst : f32 to vector<8x2x32xf32>
    %2 = arith.mulf %0, %1 : vector<8x2x32xf32>
    %c0_2 = arith.constant 0 : index
    %c0_3 = arith.constant 0 : index
    %c0_4 = arith.constant 0 : index
    %3 = vector.load %arg2[%c0_2, %c0_3, %c0_4] : memref<8x1x32xf32, #tpu.memory_space<vmem>>, vector<8x1x32xf32>
    %4 = vector.broadcast %3 : vector<8x1x32xf32> to vector<8x2x32xf32>
    %5 = arith.addf %2, %4 : vector<8x2x32xf32>
    %c0_5 = arith.constant 0 : index
    %c0_6 = arith.constant 0 : index
    %c0_7 = arith.constant 0 : index
    %6 = vector.load %arg3[%c0_5, %c0_6, %c0_7] : memref<8x2x32xf32, #tpu.memory_space<vmem>>, vector<8x2x32xf32>
    tpu.vector_store %arg3[%c0_5, %c0_6, %c0_7], %5 {strides = array<i32>} : memref<8x2x32xf32, #tpu.memory_space<vmem>>, vector<8x2x32xf32>,
    return
  }
  func.func @transform_0(%arg0: i32) -> (i32, i32, i32) {
    %c0_i32 = arith.constant 0 : i32
    %c0_i32_0 = arith.constant 0 : i32
    %c0_i32_1 = arith.constant 0 : i32
    %c0_i32_2 = arith.constant 0 : i32
    return %c0_i32, %c0_i32_0, %c0_i32_1 : i32, i32, i32
  }
  func.func @transform_1(%arg0: i32) -> (i32, i32, i32) {
    %c0_i32 = arith.constant 0 : i32
    %c0_i32_0 = arith.constant 0 : i32
    %c0_i32_1 = arith.constant 0 : i32
    %c0_i32_2 = arith.constant 0 : i32
    return %c0_i32, %c0_i32_0, %c0_i32_1 : i32, i32, i32
  }
  func.func @transform_2(%arg0: i32) -> (i32, i32, i32) {
    %c0_i32 = arith.constant 0 : i32
    %c0_i32_0 = arith.constant 0 : i32
    %c0_i32_1 = arith.constant 0 : i32
    %c0_i32_2 = arith.constant 0 : i32
    return %c0_i32, %c0_i32_0, %c0_i32_1 : i32, i32, i32
  }
}

module attributes {stable_mosaic.version = 11 : i64} {
  func.func @_linear_kernel(%arg0: i32, %arg1: memref<16x32xf32, #tpu.memory_space<vmem>>, %arg2: memref<32x96xf32, #tpu.memory_space<vmem>>, %arg3: memref<1x96xf32, #tpu.memory_space<vmem>>, %arg4: memref<16x96xf32, #tpu.memory_space<vmem>>) attributes {dimension_semantics = [#tpu.dimension_semantics<arbitrary>], iteration_bounds = array<i64: 1>, scalar_prefetch = 0 : i64, scratch_operands = 0 : i64, tpu.core_type = #tpu.core_type<tc>, window_params = [{pipeline_mode = #tpu.pipeline_mode<synchronous>, transform_indices = @transform_0, window_bounds = array<i64: 16, 32>}, {pipeline_mode = #tpu.pipeline_mode<synchronous>, transform_indices = @transform_1, window_bounds = array<i64: 32, 96>}, {pipeline_mode = #tpu.pipeline_mode<synchronous>, transform_indices = @transform_2, window_bounds = array<i64: 1, 96>}, {pipeline_mode = #tpu.pipeline_mode<synchronous>, transform_indices = @transform_3, window_bounds = array<i64: 16, 96>}]} {
    %c0 = arith.constant 0 : index
    %c0_0 = arith.constant 0 : index
    %0 = vector.load %arg1[%c0, %c0_0] : memref<16x32xf32, #tpu.memory_space<vmem>>, vector<16x32xf32>
    %1 = arith.truncf %0 : vector<16x32xf32> to vector<16x32xbf16>
    %c0_1 = arith.constant 0 : index
    %c0_2 = arith.constant 0 : index
    %2 = vector.load %arg2[%c0_1, %c0_2] : memref<32x96xf32, #tpu.memory_space<vmem>>, vector<32x96xf32>
    %3 = arith.truncf %2 : vector<32x96xf32> to vector<32x96xbf16>
    %cst = arith.constant dense<0.000000e+00> : vector<16x96xf32>
    %4 = tpu.matmul %1, %3, %cst {dimension_numbers = #tpu.dot_dimension_numbers<[1], [0], [0], [1], [0, 0, 1, 1], [], []>} : vector<16x32xbf16>, vector<32x96xbf16>, vector<16x96xf32> -> vector<16x96xf32>
    %c0_3 = arith.constant 0 : index
    %c0_4 = arith.constant 0 : index
    %5 = vector.load %arg3[%c0_3, %c0_4] : memref<1x96xf32, #tpu.memory_space<vmem>>, vector<1x96xf32>
    %6 = vector.broadcast %5 : vector<1x96xf32> to vector<16x96xf32>
    %7 = arith.addf %4, %6 : vector<16x96xf32>
    %c0_5 = arith.constant 0 : index
    %c0_6 = arith.constant 0 : index
    %8 = vector.load %arg4[%c0_5, %c0_6] : memref<16x96xf32, #tpu.memory_space<vmem>>, vector<16x96xf32>
    tpu.vector_store %arg4[%c0_5, %c0_6], %7 {strides = array<i32>} : memref<16x96xf32, #tpu.memory_space<vmem>>, vector<16x96xf32>,
    return
  }
  func.func @transform_0(%arg0: i32) -> (i32, i32) {
    %c0_i32 = arith.constant 0 : i32
    %c0_i32_0 = arith.constant 0 : i32
    %c0_i32_1 = arith.constant 0 : i32
    return %c0_i32, %c0_i32_0 : i32, i32
  }
  func.func @transform_1(%arg0: i32) -> (i32, i32) {
    %c0_i32 = arith.constant 0 : i32
    %c0_i32_0 = arith.constant 0 : i32
    %c0_i32_1 = arith.constant 0 : i32
    return %c0_i32, %c0_i32_0 : i32, i32
  }
  func.func @transform_2(%arg0: i32) -> (i32, i32) {
    %c0_i32 = arith.constant 0 : i32
    %c0_i32_0 = arith.constant 0 : i32
    %c0_i32_1 = arith.constant 0 : i32
    return %c0_i32, %c0_i32_0 : i32, i32
  }
  func.func @transform_3(%arg0: i32) -> (i32, i32) {
    %c0_i32 = arith.constant 0 : i32
    %c0_i32_0 = arith.constant 0 : i32
    %c0_i32_1 = arith.constant 0 : i32
    return %c0_i32, %c0_i32_0 : i32, i32
  }
}

module attributes {stable_mosaic.version = 11 : i64} {
  func.func @_mha_kernel(%arg0: i32, %arg1: memref<8x8x8xf32, #tpu.memory_space<vmem>>, %arg2: memref<8x8x8xf32, #tpu.memory_space<vmem>>, %arg3: memref<8x8x8xf32, #tpu.memory_space<vmem>>, %arg4: memref<8x8x8xf32, #tpu.memory_space<vmem>>) attributes {dimension_semantics = [#tpu.dimension_semantics<arbitrary>], iteration_bounds = array<i64: 1>, scalar_prefetch = 0 : i64, scratch_operands = 0 : i64, tpu.core_type = #tpu.core_type<tc>, window_params = [{pipeline_mode = #tpu.pipeline_mode<synchronous>, transform_indices = @transform_0, window_bounds = array<i64: 8, 8, 8>}, {pipeline_mode = #tpu.pipeline_mode<synchronous>, transform_indices = @transform_1, window_bounds = array<i64: 8, 8, 8>}, {pipeline_mode = #tpu.pipeline_mode<synchronous>, transform_indices = @transform_2, window_bounds = array<i64: 8, 8, 8>}, {pipeline_mode = #tpu.pipeline_mode<synchronous>, transform_indices = @transform_3, window_bounds = array<i64: 8, 8, 8>}]} {
    %c0 = arith.constant 0 : index
    %c0_0 = arith.constant 0 : index
    %c0_1 = arith.constant 0 : index
    %0 = vector.load %arg1[%c0, %c0_0, %c0_1] : memref<8x8x8xf32, #tpu.memory_space<vmem>>, vector<8x8x8xf32>
    %1 = arith.truncf %0 : vector<8x8x8xf32> to vector<8x8x8xbf16>
    %c0_2 = arith.constant 0 : index
    %c0_3 = arith.constant 0 : index
    %c0_4 = arith.constant 0 : index
    %2 = vector.load %arg2[%c0_2, %c0_3, %c0_4] : memref<8x8x8xf32, #tpu.memory_space<vmem>>, vector<8x8x8xf32>
    %3 = arith.truncf %2 : vector<8x8x8xf32> to vector<8x8x8xbf16>
    "tpu.trace_start"() <{level = 10 : i32, message = "bqd,bkd->bqk"}> : () -> ()
    %cst = arith.constant dense<0.000000e+00> : vector<8x8x8xf32>
    %4 = tpu.matmul %1, %3, %cst {dimension_numbers = #tpu.dot_dimension_numbers<[2], [2], [1], [1], [0, 0, 0, 1, 1, 1], [0], [0]>} : vector<8x8x8xbf16>, vector<8x8x8xbf16>, vector<8x8x8xf32> -> vector<8x8x8xf32>
    "tpu.trace_stop"() : () -> ()
    %cst_5 = arith.constant 0.353553385 : f32
    %5 = vector.broadcast %cst_5 : f32 to vector<8x8x8xf32>
    %6 = arith.mulf %4, %5 : vector<8x8x8xf32>
    %7 = tpu.iota {dimensions = array<i32: 0>} : vector<8x8xi32>
    %8 = tpu.iota {dimensions = array<i32: 1>} : vector<8x8xi32>
    %9 = arith.cmpi sle, %8, %7 : vector<8x8xi32>
    %cst_6 = arith.constant 0.000000e+00 : f32
    %cst_7 = arith.constant -1.000000e+30 : f32
    %10 = vector.broadcast %cst_6 : f32 to vector<8x8xf32>
    %11 = vector.broadcast %cst_7 : f32 to vector<8x8xf32>
    %12 = arith.select %9, %10, %11 : vector<8x8xi1>, vector<8x8xf32>
    %13 = vector.shape_cast %12 : vector<8x8xf32> to vector<1x8x8xf32>
    %14 = vector.broadcast %13 : vector<1x8x8xf32> to vector<8x8x8xf32>
    %15 = arith.addf %6, %14 : vector<8x8x8xf32>
    %cst_8 = arith.constant dense<0xFF800000> : vector<8x8xf32>
    %16 = vector.multi_reduction <maximumf>, %15, %cst_8 [2] : vector<8x8x8xf32> to vector<8x8xf32>
    %17 = vector.shape_cast %16 : vector<8x8xf32> to vector<8x8x1xf32>
    %18 = vector.broadcast %17 : vector<8x8x1xf32> to vector<8x8x8xf32>
    %19 = arith.subf %15, %18 : vector<8x8x8xf32>
    %20 = math.exp %19 : vector<8x8x8xf32>
    %cst_9 = arith.constant dense<0.000000e+00> : vector<8x8xf32>
    %21 = vector.multi_reduction <add>, %20, %cst_9 [2] : vector<8x8x8xf32> to vector<8x8xf32>
    %22 = vector.shape_cast %21 : vector<8x8xf32> to vector<8x8x1xf32>
    %23 = arith.truncf %20 : vector<8x8x8xf32> to vector<8x8x8xbf16>
    %c0_10 = arith.constant 0 : index
    %c0_11 = arith.constant 0 : index
    %c0_12 = arith.constant 0 : index
    %24 = vector.load %arg3[%c0_10, %c0_11, %c0_12] : memref<8x8x8xf32, #tpu.memory_space<vmem>>, vector<8x8x8xf32>
    %25 = arith.truncf %24 : vector<8x8x8xf32> to vector<8x8x8xbf16>
    "tpu.trace_start"() <{level = 10 : i32, message = "bqk,bkd->bqd"}> : () -> ()
    %cst_13 = arith.constant dense<0.000000e+00> : vector<8x8x8xf32>
    %26 = tpu.matmul %23, %25, %cst_13 {dimension_numbers = #tpu.dot_dimension_numbers<[2], [1], [1], [2], [0, 0, 0, 1, 1, 2], [0], [0]>} : vector<8x8x8xbf16>, vector<8x8x8xbf16>, vector<8x8x8xf32> -> vector<8x8x8xf32>
    "tpu.trace_stop"() : () -> ()
    %27 = tpu.reciprocal %22 {approx = true} : vector<8x8x1xf32> -> vector<8x8x1xf32>
    %28 = vector.broadcast %27 : vector<8x8x1xf32> to vector<8x8x8xf32>
    %29 = arith.mulf %26, %28 : vector<8x8x8xf32>
    %c0_14 = arith.constant 0 : index
    %c0_15 = arith.constant 0 : index
    %c0_16 = arith.constant 0 : index
    %30 = vector.load %arg4[%c0_14, %c0_15, %c0_16] : memref<8x8x8xf32, #tpu.memory_space<vmem>>, vector<8x8x8xf32>
    tpu.vector_store %arg4[%c0_14, %c0_15, %c0_16], %29 {strides = array<i32>} : memref<8x8x8xf32, #tpu.memory_space<vmem>>, vector<8x8x8xf32>,
    return
  }
  func.func @transform_0(%arg0: i32) -> (i32, i32, i32) {
    %c0_i32 = arith.constant 0 : i32
    %c0_i32_0 = arith.constant 0 : i32
    %c0_i32_1 = arith.constant 0 : i32
    %c0_i32_2 = arith.constant 0 : i32
    return %c0_i32, %c0_i32_0, %c0_i32_1 : i32, i32, i32
  }
  func.func @transform_1(%arg0: i32) -> (i32, i32, i32) {
    %c0_i32 = arith.constant 0 : i32
    %c0_i32_0 = arith.constant 0 : i32
    %c0_i32_1 = arith.constant 0 : i32
    %c0_i32_2 = arith.constant 0 : i32
    return %c0_i32, %c0_i32_0, %c0_i32_1 : i32, i32, i32
  }
  func.func @transform_2(%arg0: i32) -> (i32, i32, i32) {
    %c0_i32 = arith.constant 0 : i32
    %c0_i32_0 = arith.constant 0 : i32
    %c0_i32_1 = arith.constant 0 : i32
    %c0_i32_2 = arith.constant 0 : i32
    return %c0_i32, %c0_i32_0, %c0_i32_1 : i32, i32, i32
  }
  func.func @transform_3(%arg0: i32) -> (i32, i32, i32) {
    %c0_i32 = arith.constant 0 : i32
    %c0_i32_0 = arith.constant 0 : i32
    %c0_i32_1 = arith.constant 0 : i32
    %c0_i32_2 = arith.constant 0 : i32
    return %c0_i32, %c0_i32_0, %c0_i32_1 : i32, i32, i32
  }
}

module attributes {stable_mosaic.version = 11 : i64} {
  func.func @_proj_add_ln_kernel(%arg0: i32, %arg1: memref<16x32xf32, #tpu.memory_space<vmem>>, %arg2: memref<16x32xf32, #tpu.memory_space<vmem>>, %arg3: memref<32x32xf32, #tpu.memory_space<vmem>>, %arg4: memref<1x32xf32, #tpu.memory_space<vmem>>, %arg5: memref<1x32xf32, #tpu.memory_space<vmem>>, %arg6: memref<1x32xf32, #tpu.memory_space<vmem>>, %arg7: memref<16x32xf32, #tpu.memory_space<vmem>>) attributes {dimension_semantics = [#tpu.dimension_semantics<arbitrary>], iteration_bounds = array<i64: 1>, scalar_prefetch = 0 : i64, scratch_operands = 0 : i64, tpu.core_type = #tpu.core_type<tc>, window_params = [{pipeline_mode = #tpu.pipeline_mode<synchronous>, transform_indices = @transform_0, window_bounds = array<i64: 16, 32>}, {pipeline_mode = #tpu.pipeline_mode<synchronous>, transform_indices = @transform_1, window_bounds = array<i64: 16, 32>}, {pipeline_mode = #tpu.pipeline_mode<synchronous>, transform_indices = @transform_2, window_bounds = array<i64: 32, 32>}, {pipeline_mode = #tpu.pipeline_mode<synchronous>, transform_indices = @transform_3, window_bounds = array<i64: 1, 32>}, {pipeline_mode = #tpu.pipeline_mode<synchronous>, transform_indices = @transform_4, window_bounds = array<i64: 1, 32>}, {pipeline_mode = #tpu.pipeline_mode<synchronous>, transform_indices = @transform_5, window_bounds = array<i64: 1, 32>}, {pipeline_mode = #tpu.pipeline_mode<synchronous>, transform_indices = @transform_6, window_bounds = array<i64: 16, 32>}]} {
    %c0 = arith.constant 0 : index
    %c0_0 = arith.constant 0 : index
    %0 = vector.load %arg1[%c0, %c0_0] : memref<16x32xf32, #tpu.memory_space<vmem>>, vector<16x32xf32>
    %1 = arith.truncf %0 : vector<16x32xf32> to vector<16x32xbf16>
    %c0_1 = arith.constant 0 : index
    %c0_2 = arith.constant 0 : index
    %2 = vector.load %arg3[%c0_1, %c0_2] : memref<32x32xf32, #tpu.memory_space<vmem>>, vector<32x32xf32>
    %3 = arith.truncf %2 : vector<32x32xf32> to vector<32x32xbf16>
    %cst = arith.constant dense<0.000000e+00> : vector<16x32xf32>
    %4 = tpu.matmul %1, %3, %cst {dimension_numbers = #tpu.dot_dimension_numbers<[1], [0], [0], [1], [0, 0, 1, 1], [], []>} : vector<16x32xbf16>, vector<32x32xbf16>, vector<16x32xf32> -> vector<16x32xf32>
    %c0_3 = arith.constant 0 : index
    %c0_4 = arith.constant 0 : index
    %5 = vector.load %arg4[%c0_3, %c0_4] : memref<1x32xf32, #tpu.memory_space<vmem>>, vector<1x32xf32>
    %6 = vector.broadcast %5 : vector<1x32xf32> to vector<16x32xf32>
    %7 = arith.addf %4, %6 : vector<16x32xf32>
    %c0_5 = arith.constant 0 : index
    %c0_6 = arith.constant 0 : index
    %8 = vector.load %arg2[%c0_5, %c0_6] : memref<16x32xf32, #tpu.memory_space<vmem>>, vector<16x32xf32>
    %9 = arith.addf %8, %7 : vector<16x32xf32>
    %cst_7 = arith.constant dense<0.000000e+00> : vector<16xf32>
    %10 = vector.multi_reduction <add>, %9, %cst_7 [1] : vector<16x32xf32> to vector<16xf32>
    %11 = vector.shape_cast %10 : vector<16xf32> to vector<16x1xf32>
    %cst_8 = arith.constant 3.200000e+01 : f32
    %12 = vector.broadcast %cst_8 : f32 to vector<16x1xf32>
    %13 = arith.divf %11, %12 : vector<16x1xf32>
    %14 = vector.broadcast %13 : vector<16x1xf32> to vector<16x32xf32>
    %15 = arith.subf %9, %14 : vector<16x32xf32>
    %16 = arith.mulf %15, %15 : vector<16x32xf32>
    %cst_9 = arith.constant dense<0.000000e+00> : vector<16xf32>
    %17 = vector.multi_reduction <add>, %16, %cst_9 [1] : vector<16x32xf32> to vector<16xf32>
    %18 = vector.shape_cast %17 : vector<16xf32> to vector<16x1xf32>
    %cst_10 = arith.constant 3.200000e+01 : f32
    %19 = vector.broadcast %cst_10 : f32 to vector<16x1xf32>
    %20 = arith.divf %18, %19 : vector<16x1xf32>
    %21 = vector.broadcast %13 : vector<16x1xf32> to vector<16x32xf32>
    %22 = arith.subf %9, %21 : vector<16x32xf32>
    %cst_11 = arith.constant 9.99999974E-6 : f32
    %23 = vector.broadcast %cst_11 : f32 to vector<16x1xf32>
    %24 = arith.addf %20, %23 : vector<16x1xf32>
    %25 = math.rsqrt %24 : vector<16x1xf32>
    %26 = vector.broadcast %25 : vector<16x1xf32> to vector<16x32xf32>
    %27 = arith.mulf %22, %26 : vector<16x32xf32>
    %c0_12 = arith.constant 0 : index
    %c0_13 = arith.constant 0 : index
    %28 = vector.load %arg5[%c0_12, %c0_13] : memref<1x32xf32, #tpu.memory_space<vmem>>, vector<1x32xf32>
    %29 = vector.broadcast %28 : vector<1x32xf32> to vector<16x32xf32>
    %30 = arith.mulf %27, %29 : vector<16x32xf32>
    %c0_14 = arith.constant 0 : index
    %c0_15 = arith.constant 0 : index
    %31 = vector.load %arg6[%c0_14, %c0_15] : memref<1x32xf32, #tpu.memory_space<vmem>>, vector<1x32xf32>
    %32 = vector.broadcast %31 : vector<1x32xf32> to vector<16x32xf32>
    %33 = arith.addf %30, %32 : vector<16x32xf32>
    %c0_16 = arith.constant 0 : index
    %c0_17 = arith.constant 0 : index
    %34 = vector.load %arg7[%c0_16, %c0_17] : memref<16x32xf32, #tpu.memory_space<vmem>>, vector<16x32xf32>
    tpu.vector_store %arg7[%c0_16, %c0_17], %33 {strides = array<i32>} : memref<16x32xf32, #tpu.memory_space<vmem>>, vector<16x32xf32>,
    return
  }
  func.func @transform_0(%arg0: i32) -> (i32, i32) {
    %c0_i32 = arith.constant 0 : i32
    %c0_i32_0 = arith.constant 0 : i32
    %c0_i32_1 = arith.constant 0 : i32
    return %c0_i32, %c0_i32_0 : i32, i32
  }
  func.func @transform_1(%arg0: i32) -> (i32, i32) {
    %c0_i32 = arith.constant 0 : i32
    %c0_i32_0 = arith.constant 0 : i32
    %c0_i32_1 = arith.constant 0 : i32
    return %c0_i32, %c0_i32_0 : i32, i32
  }
  func.func @transform_2(%arg0: i32) -> (i32, i32) {
    %c0_i32 = arith.constant 0 : i32
    %c0_i32_0 = arith.constant 0 : i32
    %c0_i32_1 = arith.constant 0 : i32
    return %c0_i32, %c0_i32_0 : i32, i32
  }
  func.func @transform_3(%arg0: i32) -> (i32, i32) {
    %c0_i32 = arith.constant 0 : i32
    %c0_i32_0 = arith.constant 0 : i32
    %c0_i32_1 = arith.constant 0 : i32
    return %c0_i32, %c0_i32_0 : i32, i32
  }
  func.func @transform_4(%arg0: i32) -> (i32, i32) {
    %c0_i32 = arith.constant 0 : i32
    %c0_i32_0 = arith.constant 0 : i32
    %c0_i32_1 = arith.constant 0 : i32
    return %c0_i32, %c0_i32_0 : i32, i32
  }
  func.func @transform_5(%arg0: i32) -> (i32, i32) {
    %c0_i32 = arith.constant 0 : i32
    %c0_i32_0 = arith.constant 0 : i32
    %c0_i32_1 = arith.constant 0 : i32
    return %c0_i32, %c0_i32_0 : i32, i32
  }
  func.func @transform_6(%arg0: i32) -> (i32, i32) {
    %c0_i32 = arith.constant 0 : i32
    %c0_i32_0 = arith.constant 0 : i32
    %c0_i32_1 = arith.constant 0 : i32
    return %c0_i32, %c0_i32_0 : i32, i32
  }
}

module attributes {stable_mosaic.version = 11 : i64} {
  func.func @_linear_kernel(%arg0: i32, %arg1: memref<16x32xf32, #tpu.memory_space<vmem>>, %arg2: memref<32x32xf32, #tpu.memory_space<vmem>>, %arg3: memref<1x32xf32, #tpu.memory_space<vmem>>, %arg4: memref<16x32xf32, #tpu.memory_space<vmem>>) attributes {dimension_semantics = [#tpu.dimension_semantics<arbitrary>], iteration_bounds = array<i64: 1>, scalar_prefetch = 0 : i64, scratch_operands = 0 : i64, tpu.core_type = #tpu.core_type<tc>, window_params = [{pipeline_mode = #tpu.pipeline_mode<synchronous>, transform_indices = @transform_0, window_bounds = array<i64: 16, 32>}, {pipeline_mode = #tpu.pipeline_mode<synchronous>, transform_indices = @transform_1, window_bounds = array<i64: 32, 32>}, {pipeline_mode = #tpu.pipeline_mode<synchronous>, transform_indices = @transform_2, window_bounds = array<i64: 1, 32>}, {pipeline_mode = #tpu.pipeline_mode<synchronous>, transform_indices = @transform_3, window_bounds = array<i64: 16, 32>}]} {
    %c0 = arith.constant 0 : index
    %c0_0 = arith.constant 0 : index
    %0 = vector.load %arg1[%c0, %c0_0] : memref<16x32xf32, #tpu.memory_space<vmem>>, vector<16x32xf32>
    %1 = arith.truncf %0 : vector<16x32xf32> to vector<16x32xbf16>
    %c0_1 = arith.constant 0 : index
    %c0_2 = arith.constant 0 : index
    %2 = vector.load %arg2[%c0_1, %c0_2] : memref<32x32xf32, #tpu.memory_space<vmem>>, vector<32x32xf32>
    %3 = arith.truncf %2 : vector<32x32xf32> to vector<32x32xbf16>
    %cst = arith.constant dense<0.000000e+00> : vector<16x32xf32>
    %4 = tpu.matmul %1, %3, %cst {dimension_numbers = #tpu.dot_dimension_numbers<[1], [0], [0], [1], [0, 0, 1, 1], [], []>} : vector<16x32xbf16>, vector<32x32xbf16>, vector<16x32xf32> -> vector<16x32xf32>
    %c0_3 = arith.constant 0 : index
    %c0_4 = arith.constant 0 : index
    %5 = vector.load %arg3[%c0_3, %c0_4] : memref<1x32xf32, #tpu.memory_space<vmem>>, vector<1x32xf32>
    %6 = vector.broadcast %5 : vector<1x32xf32> to vector<16x32xf32>
    %7 = arith.addf %4, %6 : vector<16x32xf32>
    %c0_5 = arith.constant 0 : index
    %c0_6 = arith.constant 0 : index
    %8 = vector.load %arg4[%c0_5, %c0_6] : memref<16x32xf32, #tpu.memory_space<vmem>>, vector<16x32xf32>
    tpu.vector_store %arg4[%c0_5, %c0_6], %7 {strides = array<i32>} : memref<16x32xf32, #tpu.memory_space<vmem>>, vector<16x32xf32>,
    return
  }
  func.func @transform_0(%arg0: i32) -> (i32, i32) {
    %c0_i32 = arith.constant 0 : i32
    %c0_i32_0 = arith.constant 0 : i32
    %c0_i32_1 = arith.constant 0 : i32
    return %c0_i32, %c0_i32_0 : i32, i32
  }
  func.func @transform_1(%arg0: i32) -> (i32, i32) {
    %c0_i32 = arith.constant 0 : i32
    %c0_i32_0 = arith.constant 0 : i32
    %c0_i32_1 = arith.constant 0 : i32
    return %c0_i32, %c0_i32_0 : i32, i32
  }
  func.func @transform_2(%arg0: i32) -> (i32, i32) {
    %c0_i32 = arith.constant 0 : i32
    %c0_i32_0 = arith.constant 0 : i32
    %c0_i32_1 = arith.constant 0 : i32
    return %c0_i32, %c0_i32_0 : i32, i32
  }
  func.func @transform_3(%arg0: i32) -> (i32, i32) {
    %c0_i32 = arith.constant 0 : i32
    %c0_i32_0 = arith.constant 0 : i32
    %c0_i32_1 = arith.constant 0 : i32
    return %c0_i32, %c0_i32_0 : i32, i32
  }
}

module attributes {stable_mosaic.version = 11 : i64} {
  func.func @_mha_kernel(%arg0: i32, %arg1: memref<8x8x8xf32, #tpu.memory_space<vmem>>, %arg2: memref<8x8x8xf32, #tpu.memory_space<vmem>>, %arg3: memref<8x8x8xf32, #tpu.memory_space<vmem>>, %arg4: memref<8x8x8xf32, #tpu.memory_space<vmem>>) attributes {dimension_semantics = [#tpu.dimension_semantics<arbitrary>], iteration_bounds = array<i64: 1>, scalar_prefetch = 0 : i64, scratch_operands = 0 : i64, tpu.core_type = #tpu.core_type<tc>, window_params = [{pipeline_mode = #tpu.pipeline_mode<synchronous>, transform_indices = @transform_0, window_bounds = array<i64: 8, 8, 8>}, {pipeline_mode = #tpu.pipeline_mode<synchronous>, transform_indices = @transform_1, window_bounds = array<i64: 8, 8, 8>}, {pipeline_mode = #tpu.pipeline_mode<synchronous>, transform_indices = @transform_2, window_bounds = array<i64: 8, 8, 8>}, {pipeline_mode = #tpu.pipeline_mode<synchronous>, transform_indices = @transform_3, window_bounds = array<i64: 8, 8, 8>}]} {
    %c0 = arith.constant 0 : index
    %c0_0 = arith.constant 0 : index
    %c0_1 = arith.constant 0 : index
    %0 = vector.load %arg1[%c0, %c0_0, %c0_1] : memref<8x8x8xf32, #tpu.memory_space<vmem>>, vector<8x8x8xf32>
    %1 = arith.truncf %0 : vector<8x8x8xf32> to vector<8x8x8xbf16>
    %c0_2 = arith.constant 0 : index
    %c0_3 = arith.constant 0 : index
    %c0_4 = arith.constant 0 : index
    %2 = vector.load %arg2[%c0_2, %c0_3, %c0_4] : memref<8x8x8xf32, #tpu.memory_space<vmem>>, vector<8x8x8xf32>
    %3 = arith.truncf %2 : vector<8x8x8xf32> to vector<8x8x8xbf16>
    "tpu.trace_start"() <{level = 10 : i32, message = "bqd,bkd->bqk"}> : () -> ()
    %cst = arith.constant dense<0.000000e+00> : vector<8x8x8xf32>
    %4 = tpu.matmul %1, %3, %cst {dimension_numbers = #tpu.dot_dimension_numbers<[2], [2], [1], [1], [0, 0, 0, 1, 1, 1], [0], [0]>} : vector<8x8x8xbf16>, vector<8x8x8xbf16>, vector<8x8x8xf32> -> vector<8x8x8xf32>
    "tpu.trace_stop"() : () -> ()
    %cst_5 = arith.constant 0.353553385 : f32
    %5 = vector.broadcast %cst_5 : f32 to vector<8x8x8xf32>
    %6 = arith.mulf %4, %5 : vector<8x8x8xf32>
    %cst_6 = arith.constant dense<0xFF800000> : vector<8x8xf32>
    %7 = vector.multi_reduction <maximumf>, %6, %cst_6 [2] : vector<8x8x8xf32> to vector<8x8xf32>
    %8 = vector.shape_cast %7 : vector<8x8xf32> to vector<8x8x1xf32>
    %9 = vector.broadcast %8 : vector<8x8x1xf32> to vector<8x8x8xf32>
    %10 = arith.subf %6, %9 : vector<8x8x8xf32>
    %11 = math.exp %10 : vector<8x8x8xf32>
    %cst_7 = arith.constant dense<0.000000e+00> : vector<8x8xf32>
    %12 = vector.multi_reduction <add>, %11, %cst_7 [2] : vector<8x8x8xf32> to vector<8x8xf32>
    %13 = vector.shape_cast %12 : vector<8x8xf32> to vector<8x8x1xf32>
    %14 = arith.truncf %11 : vector<8x8x8xf32> to vector<8x8x8xbf16>
    %c0_8 = arith.constant 0 : index
    %c0_9 = arith.constant 0 : index
    %c0_10 = arith.constant 0 : index
    %15 = vector.load %arg3[%c0_8, %c0_9, %c0_10] : memref<8x8x8xf32, #tpu.memory_space<vmem>>, vector<8x8x8xf32>
    %16 = arith.truncf %15 : vector<8x8x8xf32> to vector<8x8x8xbf16>
    "tpu.trace_start"() <{level = 10 : i32, message = "bqk,bkd->bqd"}> : () -> ()
    %cst_11 = arith.constant dense<0.000000e+00> : vector<8x8x8xf32>
    %17 = tpu.matmul %14, %16, %cst_11 {dimension_numbers = #tpu.dot_dimension_numbers<[2], [1], [1], [2], [0, 0, 0, 1, 1, 2], [0], [0]>} : vector<8x8x8xbf16>, vector<8x8x8xbf16>, vector<8x8x8xf32> -> vector<8x8x8xf32>
    "tpu.trace_stop"() : () -> ()
    %18 = tpu.reciprocal %13 {approx = true} : vector<8x8x1xf32> -> vector<8x8x1xf32>
    %19 = vector.broadcast %18 : vector<8x8x1xf32> to vector<8x8x8xf32>
    %20 = arith.mulf %17, %19 : vector<8x8x8xf32>
    %c0_12 = arith.constant 0 : index
    %c0_13 = arith.constant 0 : index
    %c0_14 = arith.constant 0 : index
    %21 = vector.load %arg4[%c0_12, %c0_13, %c0_14] : memref<8x8x8xf32, #tpu.memory_space<vmem>>, vector<8x8x8xf32>
    tpu.vector_store %arg4[%c0_12, %c0_13, %c0_14], %20 {strides = array<i32>} : memref<8x8x8xf32, #tpu.memory_space<vmem>>, vector<8x8x8xf32>,
    return
  }
  func.func @transform_0(%arg0: i32) -> (i32, i32, i32) {
    %c0_i32 = arith.constant 0 : i32
    %c0_i32_0 = arith.constant 0 : i32
    %c0_i32_1 = arith.constant 0 : i32
    %c0_i32_2 = arith.constant 0 : i32
    return %c0_i32, %c0_i32_0, %c0_i32_1 : i32, i32, i32
  }
  func.func @transform_1(%arg0: i32) -> (i32, i32, i32) {
    %c0_i32 = arith.constant 0 : i32
    %c0_i32_0 = arith.constant 0 : i32
    %c0_i32_1 = arith.constant 0 : i32
    %c0_i32_2 = arith.constant 0 : i32
    return %c0_i32, %c0_i32_0, %c0_i32_1 : i32, i32, i32
  }
  func.func @transform_2(%arg0: i32) -> (i32, i32, i32) {
    %c0_i32 = arith.constant 0 : i32
    %c0_i32_0 = arith.constant 0 : i32
    %c0_i32_1 = arith.constant 0 : i32
    %c0_i32_2 = arith.constant 0 : i32
    return %c0_i32, %c0_i32_0, %c0_i32_1 : i32, i32, i32
  }
  func.func @transform_3(%arg0: i32) -> (i32, i32, i32) {
    %c0_i32 = arith.constant 0 : i32
    %c0_i32_0 = arith.constant 0 : i32
    %c0_i32_1 = arith.constant 0 : i32
    %c0_i32_2 = arith.constant 0 : i32
    return %c0_i32, %c0_i32_0, %c0_i32_1 : i32, i32, i32
  }
}

module attributes {stable_mosaic.version = 11 : i64} {
  func.func @_ffn_ln_kernel(%arg0: i32, %arg1: memref<16x32xf32, #tpu.memory_space<vmem>>, %arg2: memref<32x64xf32, #tpu.memory_space<vmem>>, %arg3: memref<1x64xf32, #tpu.memory_space<vmem>>, %arg4: memref<64x32xf32, #tpu.memory_space<vmem>>, %arg5: memref<1x32xf32, #tpu.memory_space<vmem>>, %arg6: memref<1x32xf32, #tpu.memory_space<vmem>>, %arg7: memref<1x32xf32, #tpu.memory_space<vmem>>, %arg8: memref<16x32xf32, #tpu.memory_space<vmem>>) attributes {dimension_semantics = [#tpu.dimension_semantics<arbitrary>], iteration_bounds = array<i64: 1>, scalar_prefetch = 0 : i64, scratch_operands = 0 : i64, tpu.core_type = #tpu.core_type<tc>, window_params = [{pipeline_mode = #tpu.pipeline_mode<synchronous>, transform_indices = @transform_0, window_bounds = array<i64: 16, 32>}, {pipeline_mode = #tpu.pipeline_mode<synchronous>, transform_indices = @transform_1, window_bounds = array<i64: 32, 64>}, {pipeline_mode = #tpu.pipeline_mode<synchronous>, transform_indices = @transform_2, window_bounds = array<i64: 1, 64>}, {pipeline_mode = #tpu.pipeline_mode<synchronous>, transform_indices = @transform_3, window_bounds = array<i64: 64, 32>}, {pipeline_mode = #tpu.pipeline_mode<synchronous>, transform_indices = @transform_4, window_bounds = array<i64: 1, 32>}, {pipeline_mode = #tpu.pipeline_mode<synchronous>, transform_indices = @transform_5, window_bounds = array<i64: 1, 32>}, {pipeline_mode = #tpu.pipeline_mode<synchronous>, transform_indices = @transform_6, window_bounds = array<i64: 1, 32>}, {pipeline_mode = #tpu.pipeline_mode<synchronous>, transform_indices = @transform_7, window_bounds = array<i64: 16, 32>}]} {
    %c0 = arith.constant 0 : index
    %c0_0 = arith.constant 0 : index
    %0 = vector.load %arg1[%c0, %c0_0] : memref<16x32xf32, #tpu.memory_space<vmem>>, vector<16x32xf32>
    %1 = arith.truncf %0 : vector<16x32xf32> to vector<16x32xbf16>
    %c0_1 = arith.constant 0 : index
    %c0_2 = arith.constant 0 : index
    %2 = vector.load %arg2[%c0_1, %c0_2] : memref<32x64xf32, #tpu.memory_space<vmem>>, vector<32x64xf32>
    %3 = arith.truncf %2 : vector<32x64xf32> to vector<32x64xbf16>
    %cst = arith.constant dense<0.000000e+00> : vector<16x64xf32>
    %4 = tpu.matmul %1, %3, %cst {dimension_numbers = #tpu.dot_dimension_numbers<[1], [0], [0], [1], [0, 0, 1, 1], [], []>} : vector<16x32xbf16>, vector<32x64xbf16>, vector<16x64xf32> -> vector<16x64xf32>
    %c0_3 = arith.constant 0 : index
    %c0_4 = arith.constant 0 : index
    %5 = vector.load %arg3[%c0_3, %c0_4] : memref<1x64xf32, #tpu.memory_space<vmem>>, vector<1x64xf32>
    %6 = vector.broadcast %5 : vector<1x64xf32> to vector<16x64xf32>
    %7 = arith.addf %4, %6 : vector<16x64xf32>
    %cst_5 = arith.constant 0.000000e+00 : f32
    %8 = vector.broadcast %cst_5 : f32 to vector<16x64xf32>
    %9 = arith.maximumf %7, %8 : vector<16x64xf32>
    %10 = arith.truncf %9 : vector<16x64xf32> to vector<16x64xbf16>
    %c0_6 = arith.constant 0 : index
    %c0_7 = arith.constant 0 : index
    %11 = vector.load %arg4[%c0_6, %c0_7] : memref<64x32xf32, #tpu.memory_space<vmem>>, vector<64x32xf32>
    %12 = arith.truncf %11 : vector<64x32xf32> to vector<64x32xbf16>
    %cst_8 = arith.constant dense<0.000000e+00> : vector<16x32xf32>
    %13 = tpu.matmul %10, %12, %cst_8 {dimension_numbers = #tpu.dot_dimension_numbers<[1], [0], [0], [1], [0, 0, 1, 1], [], []>} : vector<16x64xbf16>, vector<64x32xbf16>, vector<16x32xf32> -> vector<16x32xf32>
    %c0_9 = arith.constant 0 : index
    %c0_10 = arith.constant 0 : index
    %14 = vector.load %arg5[%c0_9, %c0_10] : memref<1x32xf32, #tpu.memory_space<vmem>>, vector<1x32xf32>
    %15 = vector.broadcast %14 : vector<1x32xf32> to vector<16x32xf32>
    %16 = arith.addf %13, %15 : vector<16x32xf32>
    %17 = arith.addf %0, %16 : vector<16x32xf32>
    %cst_11 = arith.constant dense<0.000000e+00> : vector<16xf32>
    %18 = vector.multi_reduction <add>, %17, %cst_11 [1] : vector<16x32xf32> to vector<16xf32>
    %19 = vector.shape_cast %18 : vector<16xf32> to vector<16x1xf32>
    %cst_12 = arith.constant 3.200000e+01 : f32
    %20 = vector.broadcast %cst_12 : f32 to vector<16x1xf32>
    %21 = arith.divf %19, %20 : vector<16x1xf32>
    %22 = vector.broadcast %21 : vector<16x1xf32> to vector<16x32xf32>
    %23 = arith.subf %17, %22 : vector<16x32xf32>
    %24 = arith.mulf %23, %23 : vector<16x32xf32>
    %cst_13 = arith.constant dense<0.000000e+00> : vector<16xf32>
    %25 = vector.multi_reduction <add>, %24, %cst_13 [1] : vector<16x32xf32> to vector<16xf32>
    %26 = vector.shape_cast %25 : vector<16xf32> to vector<16x1xf32>
    %cst_14 = arith.constant 3.200000e+01 : f32
    %27 = vector.broadcast %cst_14 : f32 to vector<16x1xf32>
    %28 = arith.divf %26, %27 : vector<16x1xf32>
    %29 = vector.broadcast %21 : vector<16x1xf32> to vector<16x32xf32>
    %30 = arith.subf %17, %29 : vector<16x32xf32>
    %cst_15 = arith.constant 9.99999974E-6 : f32
    %31 = vector.broadcast %cst_15 : f32 to vector<16x1xf32>
    %32 = arith.addf %28, %31 : vector<16x1xf32>
    %33 = math.rsqrt %32 : vector<16x1xf32>
    %34 = vector.broadcast %33 : vector<16x1xf32> to vector<16x32xf32>
    %35 = arith.mulf %30, %34 : vector<16x32xf32>
    %c0_16 = arith.constant 0 : index
    %c0_17 = arith.constant 0 : index
    %36 = vector.load %arg6[%c0_16, %c0_17] : memref<1x32xf32, #tpu.memory_space<vmem>>, vector<1x32xf32>
    %37 = vector.broadcast %36 : vector<1x32xf32> to vector<16x32xf32>
    %38 = arith.mulf %35, %37 : vector<16x32xf32>
    %c0_18 = arith.constant 0 : index
    %c0_19 = arith.constant 0 : index
    %39 = vector.load %arg7[%c0_18, %c0_19] : memref<1x32xf32, #tpu.memory_space<vmem>>, vector<1x32xf32>
    %40 = vector.broadcast %39 : vector<1x32xf32> to vector<16x32xf32>
    %41 = arith.addf %38, %40 : vector<16x32xf32>
    %c0_20 = arith.constant 0 : index
    %c0_21 = arith.constant 0 : index
    %42 = vector.load %arg8[%c0_20, %c0_21] : memref<16x32xf32, #tpu.memory_space<vmem>>, vector<16x32xf32>
    tpu.vector_store %arg8[%c0_20, %c0_21], %41 {strides = array<i32>} : memref<16x32xf32, #tpu.memory_space<vmem>>, vector<16x32xf32>,
    return
  }
  func.func @transform_0(%arg0: i32) -> (i32, i32) {
    %c0_i32 = arith.constant 0 : i32
    %c0_i32_0 = arith.constant 0 : i32
    %c0_i32_1 = arith.constant 0 : i32
    return %c0_i32, %c0_i32_0 : i32, i32
  }
  func.func @transform_1(%arg0: i32) -> (i32, i32) {
    %c0_i32 = arith.constant 0 : i32
    %c0_i32_0 = arith.constant 0 : i32
    %c0_i32_1 = arith.constant 0 : i32
    return %c0_i32, %c0_i32_0 : i32, i32
  }
  func.func @transform_2(%arg0: i32) -> (i32, i32) {
    %c0_i32 = arith.constant 0 : i32
    %c0_i32_0 = arith.constant 0 : i32
    %c0_i32_1 = arith.constant 0 : i32
    return %c0_i32, %c0_i32_0 : i32, i32
  }
  func.func @transform_3(%arg0: i32) -> (i32, i32) {
    %c0_i32 = arith.constant 0 : i32
    %c0_i32_0 = arith.constant 0 : i32
    %c0_i32_1 = arith.constant 0 : i32
    return %c0_i32, %c0_i32_0 : i32, i32
  }
  func.func @transform_4(%arg0: i32) -> (i32, i32) {
    %c0_i32 = arith.constant 0 : i32
    %c0_i32_0 = arith.constant 0 : i32
    %c0_i32_1 = arith.constant 0 : i32
    return %c0_i32, %c0_i32_0 : i32, i32
  }
  func.func @transform_5(%arg0: i32) -> (i32, i32) {
    %c0_i32 = arith.constant 0 : i32
    %c0_i32_0 = arith.constant 0 : i32
    %c0_i32_1 = arith.constant 0 : i32
    return %c0_i32, %c0_i32_0 : i32, i32
  }
  func.func @transform_6(%arg0: i32) -> (i32, i32) {
    %c0_i32 = arith.constant 0 : i32
    %c0_i32_0 = arith.constant 0 : i32
    %c0_i32_1 = arith.constant 0 : i32
    return %c0_i32, %c0_i32_0 : i32, i32
  }
  func.func @transform_7(%arg0: i32) -> (i32, i32) {
    %c0_i32 = arith.constant 0 : i32
    %c0_i32_0 = arith.constant 0 : i32
    %c0_i32_1 = arith.constant 0 : i32
    return %c0_i32, %c0_i32_0 : i32, i32
  }
}

module attributes {stable_mosaic.version = 11 : i64} {
  func.func @_linear_kernel(%arg0: i32, %arg1: memref<16x32xf32, #tpu.memory_space<vmem>>, %arg2: memref<32x64xf32, #tpu.memory_space<vmem>>, %arg3: memref<1x64xf32, #tpu.memory_space<vmem>>, %arg4: memref<16x64xf32, #tpu.memory_space<vmem>>) attributes {dimension_semantics = [#tpu.dimension_semantics<arbitrary>], iteration_bounds = array<i64: 1>, scalar_prefetch = 0 : i64, scratch_operands = 0 : i64, tpu.core_type = #tpu.core_type<tc>, window_params = [{pipeline_mode = #tpu.pipeline_mode<synchronous>, transform_indices = @transform_0, window_bounds = array<i64: 16, 32>}, {pipeline_mode = #tpu.pipeline_mode<synchronous>, transform_indices = @transform_1, window_bounds = array<i64: 32, 64>}, {pipeline_mode = #tpu.pipeline_mode<synchronous>, transform_indices = @transform_2, window_bounds = array<i64: 1, 64>}, {pipeline_mode = #tpu.pipeline_mode<synchronous>, transform_indices = @transform_3, window_bounds = array<i64: 16, 64>}]} {
    %c0 = arith.constant 0 : index
    %c0_0 = arith.constant 0 : index
    %0 = vector.load %arg1[%c0, %c0_0] : memref<16x32xf32, #tpu.memory_space<vmem>>, vector<16x32xf32>
    %1 = arith.truncf %0 : vector<16x32xf32> to vector<16x32xbf16>
    %c0_1 = arith.constant 0 : index
    %c0_2 = arith.constant 0 : index
    %2 = vector.load %arg2[%c0_1, %c0_2] : memref<32x64xf32, #tpu.memory_space<vmem>>, vector<32x64xf32>
    %3 = arith.truncf %2 : vector<32x64xf32> to vector<32x64xbf16>
    %cst = arith.constant dense<0.000000e+00> : vector<16x64xf32>
    %4 = tpu.matmul %1, %3, %cst {dimension_numbers = #tpu.dot_dimension_numbers<[1], [0], [0], [1], [0, 0, 1, 1], [], []>} : vector<16x32xbf16>, vector<32x64xbf16>, vector<16x64xf32> -> vector<16x64xf32>
    %c0_3 = arith.constant 0 : index
    %c0_4 = arith.constant 0 : index
    %5 = vector.load %arg3[%c0_3, %c0_4] : memref<1x64xf32, #tpu.memory_space<vmem>>, vector<1x64xf32>
    %6 = vector.broadcast %5 : vector<1x64xf32> to vector<16x64xf32>
    %7 = arith.addf %4, %6 : vector<16x64xf32>
    %c0_5 = arith.constant 0 : index
    %c0_6 = arith.constant 0 : index
    %8 = vector.load %arg4[%c0_5, %c0_6] : memref<16x64xf32, #tpu.memory_space<vmem>>, vector<16x64xf32>
    tpu.vector_store %arg4[%c0_5, %c0_6], %7 {strides = array<i32>} : memref<16x64xf32, #tpu.memory_space<vmem>>, vector<16x64xf32>,
    return
  }
  func.func @transform_0(%arg0: i32) -> (i32, i32) {
    %c0_i32 = arith.constant 0 : i32
    %c0_i32_0 = arith.constant 0 : i32
    %c0_i32_1 = arith.constant 0 : i32
    return %c0_i32, %c0_i32_0 : i32, i32
  }
  func.func @transform_1(%arg0: i32) -> (i32, i32) {
    %c0_i32 = arith.constant 0 : i32
    %c0_i32_0 = arith.constant 0 : i32
    %c0_i32_1 = arith.constant 0 : i32
    return %c0_i32, %c0_i32_0 : i32, i32
  }
  func.func @transform_2(%arg0: i32) -> (i32, i32) {
    %c0_i32 = arith.constant 0 : i32
    %c0_i32_0 = arith.constant 0 : i32
    %c0_i32_1 = arith.constant 0 : i32
    return %c0_i32, %c0_i32_0 : i32, i32
  }
  func.func @transform_3(%arg0: i32) -> (i32, i32) {
    %c0_i32 = arith.constant 0 : i32
    %c0_i32_0 = arith.constant 0 : i32
    %c0_i32_1 = arith.constant 0 : i32
    return %c0_i32, %c0_i32_0 : i32, i32
  }
}

module attributes {stable_mosaic.version = 11 : i64} {
  func.func @_layernorm_kernel(%arg0: i32, %arg1: memref<16x32xf32, #tpu.memory_space<vmem>>, %arg2: memref<1x32xf32, #tpu.memory_space<vmem>>, %arg3: memref<1x32xf32, #tpu.memory_space<vmem>>, %arg4: memref<16x32xf32, #tpu.memory_space<vmem>>) attributes {dimension_semantics = [#tpu.dimension_semantics<arbitrary>], iteration_bounds = array<i64: 1>, scalar_prefetch = 0 : i64, scratch_operands = 0 : i64, tpu.core_type = #tpu.core_type<tc>, window_params = [{pipeline_mode = #tpu.pipeline_mode<synchronous>, transform_indices = @transform_0, window_bounds = array<i64: 16, 32>}, {pipeline_mode = #tpu.pipeline_mode<synchronous>, transform_indices = @transform_1, window_bounds = array<i64: 1, 32>}, {pipeline_mode = #tpu.pipeline_mode<synchronous>, transform_indices = @transform_2, window_bounds = array<i64: 1, 32>}, {pipeline_mode = #tpu.pipeline_mode<synchronous>, transform_indices = @transform_3, window_bounds = array<i64: 16, 32>}]} {
    %c0 = arith.constant 0 : index
    %c0_0 = arith.constant 0 : index
    %0 = vector.load %arg1[%c0, %c0_0] : memref<16x32xf32, #tpu.memory_space<vmem>>, vector<16x32xf32>
    %cst = arith.constant dense<0.000000e+00> : vector<16xf32>
    %1 = vector.multi_reduction <add>, %0, %cst [1] : vector<16x32xf32> to vector<16xf32>
    %2 = vector.shape_cast %1 : vector<16xf32> to vector<16x1xf32>
    %cst_1 = arith.constant 3.200000e+01 : f32
    %3 = vector.broadcast %cst_1 : f32 to vector<16x1xf32>
    %4 = arith.divf %2, %3 : vector<16x1xf32>
    %5 = vector.broadcast %4 : vector<16x1xf32> to vector<16x32xf32>
    %6 = arith.subf %0, %5 : vector<16x32xf32>
    %7 = arith.mulf %6, %6 : vector<16x32xf32>
    %cst_2 = arith.constant dense<0.000000e+00> : vector<16xf32>
    %8 = vector.multi_reduction <add>, %7, %cst_2 [1] : vector<16x32xf32> to vector<16xf32>
    %9 = vector.shape_cast %8 : vector<16xf32> to vector<16x1xf32>
    %cst_3 = arith.constant 3.200000e+01 : f32
    %10 = vector.broadcast %cst_3 : f32 to vector<16x1xf32>
    %11 = arith.divf %9, %10 : vector<16x1xf32>
    %12 = vector.broadcast %4 : vector<16x1xf32> to vector<16x32xf32>
    %13 = arith.subf %0, %12 : vector<16x32xf32>
    %cst_4 = arith.constant 9.99999974E-6 : f32
    %14 = vector.broadcast %cst_4 : f32 to vector<16x1xf32>
    %15 = arith.addf %11, %14 : vector<16x1xf32>
    %16 = math.rsqrt %15 : vector<16x1xf32>
    %17 = vector.broadcast %16 : vector<16x1xf32> to vector<16x32xf32>
    %18 = arith.mulf %13, %17 : vector<16x32xf32>
    %c0_5 = arith.constant 0 : index
    %c0_6 = arith.constant 0 : index
    %19 = vector.load %arg2[%c0_5, %c0_6] : memref<1x32xf32, #tpu.memory_space<vmem>>, vector<1x32xf32>
    %20 = vector.broadcast %19 : vector<1x32xf32> to vector<16x32xf32>
    %21 = arith.mulf %18, %20 : vector<16x32xf32>
    %c0_7 = arith.constant 0 : index
    %c0_8 = arith.constant 0 : index
    %22 = vector.load %arg3[%c0_7, %c0_8] : memref<1x32xf32, #tpu.memory_space<vmem>>, vector<1x32xf32>
    %23 = vector.broadcast %22 : vector<1x32xf32> to vector<16x32xf32>
    %24 = arith.addf %21, %23 : vector<16x32xf32>
    %c0_9 = arith.constant 0 : index
    %c0_10 = arith.constant 0 : index
    %25 = vector.load %arg4[%c0_9, %c0_10] : memref<16x32xf32, #tpu.memory_space<vmem>>, vector<16x32xf32>
    tpu.vector_store %arg4[%c0_9, %c0_10], %24 {strides = array<i32>} : memref<16x32xf32, #tpu.memory_space<vmem>>, vector<16x32xf32>,
    return
  }
  func.func @transform_0(%arg0: i32) -> (i32, i32) {
    %c0_i32 = arith.constant 0 : i32
    %c0_i32_0 = arith.constant 0 : i32
    %c0_i32_1 = arith.constant 0 : i32
    return %c0_i32, %c0_i32_0 : i32, i32
  }
  func.func @transform_1(%arg0: i32) -> (i32, i32) {
    %c0_i32 = arith.constant 0 : i32
    %c0_i32_0 = arith.constant 0 : i32
    %c0_i32_1 = arith.constant 0 : i32
    return %c0_i32, %c0_i32_0 : i32, i32
  }
  func.func @transform_2(%arg0: i32) -> (i32, i32) {
    %c0_i32 = arith.constant 0 : i32
    %c0_i32_0 = arith.constant 0 : i32
    %c0_i32_1 = arith.constant 0 : i32
    return %c0_i32, %c0_i32_0 : i32, i32
  }
  func.func @transform_3(%arg0: i32) -> (i32, i32) {
    %c0_i32 = arith.constant 0 : i32
    %c0_i32_0 = arith.constant 0 : i32
    %c0_i32_1 = arith.constant 0 : i32
    return %c0_i32, %c0_i32_0 : i32, i32
  }
}

module attributes {stable_mosaic.version = 11 : i64} {
  func.func @_linear_kernel(%arg0: i32, %arg1: memref<16x32xf32, #tpu.memory_space<vmem>>, %arg2: memref<32x128xf32, #tpu.memory_space<vmem>>, %arg3: memref<1x128xf32, #tpu.memory_space<vmem>>, %arg4: memref<16x128xf32, #tpu.memory_space<vmem>>) attributes {dimension_semantics = [#tpu.dimension_semantics<arbitrary>], iteration_bounds = array<i64: 1>, scalar_prefetch = 0 : i64, scratch_operands = 0 : i64, tpu.core_type = #tpu.core_type<tc>, window_params = [{pipeline_mode = #tpu.pipeline_mode<synchronous>, transform_indices = @transform_0, window_bounds = array<i64: 16, 32>}, {pipeline_mode = #tpu.pipeline_mode<synchronous>, transform_indices = @transform_1, window_bounds = array<i64: 32, 128>}, {pipeline_mode = #tpu.pipeline_mode<synchronous>, transform_indices = @transform_2, window_bounds = array<i64: 1, 128>}, {pipeline_mode = #tpu.pipeline_mode<synchronous>, transform_indices = @transform_3, window_bounds = array<i64: 16, 128>}]} {
    %c0 = arith.constant 0 : index
    %c0_0 = arith.constant 0 : index
    %0 = vector.load %arg1[%c0, %c0_0] : memref<16x32xf32, #tpu.memory_space<vmem>>, vector<16x32xf32>
    %1 = arith.truncf %0 : vector<16x32xf32> to vector<16x32xbf16>
    %c0_1 = arith.constant 0 : index
    %c0_2 = arith.constant 0 : index
    %2 = vector.load %arg2[%c0_1, %c0_2] : memref<32x128xf32, #tpu.memory_space<vmem>>, vector<32x128xf32>
    %3 = arith.truncf %2 : vector<32x128xf32> to vector<32x128xbf16>
    %cst = arith.constant dense<0.000000e+00> : vector<16x128xf32>
    %4 = tpu.matmul %1, %3, %cst {dimension_numbers = #tpu.dot_dimension_numbers<[1], [0], [0], [1], [0, 0, 1, 1], [], []>} : vector<16x32xbf16>, vector<32x128xbf16>, vector<16x128xf32> -> vector<16x128xf32>
    %c0_3 = arith.constant 0 : index
    %c0_4 = arith.constant 0 : index
    %5 = vector.load %arg3[%c0_3, %c0_4] : memref<1x128xf32, #tpu.memory_space<vmem>>, vector<1x128xf32>
    %6 = vector.broadcast %5 : vector<1x128xf32> to vector<16x128xf32>
    %7 = arith.addf %4, %6 : vector<16x128xf32>
    %c0_5 = arith.constant 0 : index
    %c0_6 = arith.constant 0 : index
    %8 = vector.load %arg4[%c0_5, %c0_6] : memref<16x128xf32, #tpu.memory_space<vmem>>, vector<16x128xf32>
    tpu.vector_store %arg4[%c0_5, %c0_6], %7 {strides = array<i32>} : memref<16x128xf32, #tpu.memory_space<vmem>>, vector<16x128xf32>,
    return
  }
  func.func @transform_0(%arg0: i32) -> (i32, i32) {
    %c0_i32 = arith.constant 0 : i32
    %c0_i32_0 = arith.constant 0 : i32
    %c0_i32_1 = arith.constant 0 : i32
    return %c0_i32, %c0_i32_0 : i32, i32
  }
  func.func @transform_1(%arg0: i32) -> (i32, i32) {
    %c0_i32 = arith.constant 0 : i32
    %c0_i32_0 = arith.constant 0 : i32
    %c0_i32_1 = arith.constant 0 : i32
    return %c0_i32, %c0_i32_0 : i32, i32
  }
  func.func @transform_2(%arg0: i32) -> (i32, i32) {
    %c0_i32 = arith.constant 0 : i32
    %c0_i32_0 = arith.constant 0 : i32
    %c0_i32_1 = arith.constant 0 : i32
    return %c0_i32, %c0_i32_0 : i32, i32
  }
  func.func @transform_3(%arg0: i32) -> (i32, i32) {
    %c0_i32 = arith.constant 0 : i32
    %c0_i32_0 = arith.constant 0 : i32
    %c0_i32_1 = arith.constant 0 : i32
    return %c0_i32, %c0_i32_0 : i32, i32
  }
}

</mosaic_0001>

<bundles_post_ra>
// kernel: transformer_forward.39
= control target key start
LH: loop header
LB: loop body
LE: loop exit
PB: predicated region body
PF: predicated region fallthrough
CT: control target
= control target key end

     0   :  { %vm91_vm0 = vcmask 254976   ;;  %s207_s0 = inlined_call_operand.vmem [shape: f32[8,2,32], index: 0, kind: input, shape index: {}]   ;;  %s208_s1 = inlined_call_operand.vmem [shape: f32[8,1,32], index: 1, kind: input, shape index: {}]   ;;  %s209_s2 = inlined_call_operand.vmem [shape: f32[8,2,32], index: 2, kind: output, shape index: {}]  }
   0x1   :  { %v11_v0 = vld [vmem:[%s207_s0] sm:$0x3]  ;;  %v12_v2 = vld [vmem:[%s207_s0 + $0x2] sm:$0x3]  ;;  %v13_v6 = vld [vmem:[%s207_s0 + $0x4] sm:$0x3] }
   0x2   :  { %v104_v1 = vld [vmem:[%s208_s1] ss:$0 sm:$0xff]  ;;  %v19_v3 = vmul.f32 5.656854, %v11_v0  ;;  %v20_v4 = vmul.f32 5.656854, %v12_v2 }
   0x3   :  { %v105_v5 = vld [vmem:[%s208_s1 + $0x1] ss:$0 sm:$0xff]  ;;  %v106_v7 = vld [vmem:[%s208_s1 + $0x2] ss:$0 sm:$0xff]  ;;  %v14_v8 = vld [vmem:[%s207_s0 + $0x6] sm:$0x3] }
   0x4   :  { %v83_v9 = vadd.f32 %v104_v1, %v19_v3  ;;  %v84_v10 = vadd.f32 %v105_v5, %v20_v4  ;;  %v21_v11 = vmul.f32 5.656854, %v13_v6  ;;  %v22_v12 = vmul.f32 5.656854, %v14_v8  ;;  %v107_v13 = vld [vmem:[%s208_s1 + $0x3] ss:$0 sm:$0xff] }
   0x5   :  { %v15_v14 = vld [vmem:[%s207_s0 + $0x8] sm:$0x3]  ;;  %v108_v15 = vld [vmem:[%s208_s1 + $0x4] ss:$0 sm:$0xff]  ;;  %v16_v16 = vld [vmem:[%s207_s0 + $0xa] sm:$0x3] }
   0x6   :  { %92 = vst.msk [vmem:[%s209_s2] sm:$0x3] %vm91_vm0, %v83_v9  ;;  %93 = vst.msk [vmem:[%s209_s2 + $0x2] sm:$0x3] %vm91_vm0, %v84_v10  ;;  %v85_v17 = vadd.f32 %v106_v7, %v21_v11  ;;  %v86_v18 = vadd.f32 %v107_v13, %v22_v12  ;;  %v23_v19 = vmul.f32 5.656854, %v15_v14 }
   0x7   :  { %v24_v20 = vmul.f32 5.656854, %v16_v16  ;;  %v109_v21 = vld [vmem:[%s208_s1 + $0x5] ss:$0 sm:$0xff]  ;;  %v17_v22 = vld [vmem:[%s207_s0 + $0xc] sm:$0x3] }
   0x8   :  { %v110_v23 = vld [vmem:[%s208_s1 + $0x6] ss:$0 sm:$0xff]  ;;  %v18_v24 = vld [vmem:[%s207_s0 + $0xe] sm:$0x3]  ;;  %94 = vst.msk [vmem:[%s209_s2 + $0x4] sm:$0x3] %vm91_vm0, %v85_v17  ;;  %v87_v25 = vadd.f32 %v108_v15, %v23_v19 }
   0x9   :  { %95 = vst.msk [vmem:[%s209_s2 + $0x6] sm:$0x3] %vm91_vm0, %v86_v18  ;;  %v88_v26 = vadd.f32 %v109_v21, %v24_v20  ;;  %v25_v27 = vmul.f32 5.656854, %v17_v22  ;;  %v26_v28 = vmul.f32 5.656854, %v18_v24 }
   0xa   :  { %v111_v29 = vld [vmem:[%s208_s1 + $0x7] ss:$0 sm:$0xff]  ;;  %96 = vst.msk [vmem:[%s209_s2 + $0x8] sm:$0x3] %vm91_vm0, %v87_v25 }
   0xb   :  { %97 = vst.msk [vmem:[%s209_s2 + $0xa] sm:$0x3] %vm91_vm0, %v88_v26  ;;  %v89_v30 = vadd.f32 %v110_v23, %v25_v27  ;;  %v90_v31 = vadd.f32 %v111_v29, %v26_v28 }
   0xd   :  { %98 = vst.msk [vmem:[%s209_s2 + $0xc] sm:$0x3] %vm91_vm0, %v89_v30  ;;  %99 = vst.msk [vmem:[%s209_s2 + $0xe] sm:$0x3] %vm91_vm0, %v90_v31 }

// kernel: transformer_forward.40
= control target key start
LH: loop header
LB: loop body
LE: loop exit
PB: predicated region body
PF: predicated region fallthrough
CT: control target
= control target key end

     0   :  { %v98_v0 = vmov 0.0   ;;  %vm99_vm0 = vmmov 0   ;;  %vm31_vm1 = vcmask 261120   ;;  %vm76_vm2 = vcmask 785408   ;;  %s147_s1 = inlined_call_operand.vmem [shape: f32[32,96], index: 1, kind: input, shape index: {}]   ;;  %s148_s0 = inlined_call_operand.vmem [shape: f32[16,32], index: 0, kind: input, shape index: {}]   ;;  %s149_s2 = inlined_call_operand.vmem [shape: f32[1,96], index: 2, kind: input, shape index: {}]   ;;  %s150_s3 = inlined_call_operand.vmem [shape: f32[16,96], index: 3, kind: output, shape index: {}]  }
   0x1   :  { %88 = vmatprep.subr.bf16.mxu0 %v98_v0  ;;  %v18_v1 = vld [vmem:[%s147_s1] sm:$0xff]  ;;  %v19_v2 = vld [vmem:[%s147_s1 + $0x8] sm:$0xff]  ;;  %v20_v3 = vld [vmem:[%s147_s1 + $0x10] sm:$0xff]  ;;  %92 = vmatprep.mubr.msk.bf16.mxu0 %vm99_vm0, %v98_v0 }
   0x2   :  { %v22_v4 = vpack.c.bf16 %v19_v2, %v18_v1  ;;  %v21_v5 = vld [vmem:[%s147_s1 + $0x18] sm:$0xff]  ;;  %v15_v7 = vld [vmem:[%s148_s0] sm:$0xff]  ;;  %v16_v8 = vld [vmem:[%s148_s0 + $0x8] sm:$0xff] }
   0x3   :  { %v23_v6 = vpack.c.bf16 %v21_v5, %v20_v3  ;;  %v17_v9 = vpack.c.bf16 %v16_v8, %v15_v7  ;;  %v83_v10 = vld [vmem:[%s149_s2] ss:$0 sm:$0xff] }
   0x4   :  { %89 = vmatpush3.bf16.msra.mxu0 %v22_v4 }
   0x5   :  { %90 = vmatprep.subr.bf16.mxu0 %v98_v0 }
   0x8   :  { %91 = vmatpush3.bf16.msra.mxu0 %v23_v6 }
   0xb   :  { %93 = vmatmul.mubr.msk.bf16.vlgmr.msra.gmra.mrb[0].mxu0 %vm31_vm1, %v17_v9 }
  0xde   :  { %v69_v11 = vpop.f32.mrb[0].mxu0 }
  0xdf   :  { %v70_v12 = vadd.f32 %v83_v10, %v69_v11  ;;  %v94_v13 = vpop.f32.mrb[1].mxu0 }
  0xe0   :  { %v72_v14 = vpop.f32.mrb[2].mxu0 }
  0xe1   :  { %77 = vst.msk [vmem:[%s150_s3] sm:$0xff] %vm76_vm2, %v70_v12  ;;  %v73_v15 = vadd.f32 %v83_v10, %v72_v14  ;;  %v95_v16 = vpop.f32.mrb[3].mxu0 }
  0xe3   :  { %78 = vst.msk [vmem:[%s150_s3 + $0x8] sm:$0xff] %vm76_vm2, %v73_v15 }

// kernel: transformer_forward.42
= control target key start
LH: loop header
LB: loop body
LE: loop exit
PB: predicated region body
PF: predicated region fallthrough
CT: control target
= control target key end

     0   :  { %v161_v0 = vmov 0.0   ;;  %vm162_vm0 = vmmov 0   ;;  %vm40_vm1 = vcmask 261120   ;;  %s244_s2 = inlined_call_operand.vmem [shape: f32[32,32], index: 2, kind: input, shape index: {}]   ;;  %s245_s0 = inlined_call_operand.vmem [shape: f32[16,32], index: 0, kind: input, shape index: {}]   ;;  %s246_s3 = inlined_call_operand.vmem [shape: f32[1,32], index: 3, kind: input, shape index: {}]   ;;  %s247_s1 = inlined_call_operand.vmem [shape: f32[16,32], index: 1, kind: input, shape index: {}]   ;;  %s248_s4 = inlined_call_operand.vmem [shape: f32[1,32], index: 4, kind: input, shape index: {}]   ;;  %s249_s5 = inlined_call_operand.vmem [shape: f32[1,32], index: 5, kind: input, shape index: {}]   ;;  %s250_s6 = inlined_call_operand.vmem [shape: f32[16,32], index: 6, kind: output, shape index: {}]  }
   0x1   :  { %147 = vmatprep.subr.bf16.mxu0 %v161_v0  ;;  %v27_v1 = vld [vmem:[%s244_s2] sm:$0xff]  ;;  %v28_v2 = vld [vmem:[%s244_s2 + $0x8] sm:$0xff]  ;;  %v29_v3 = vld [vmem:[%s244_s2 + $0x10] sm:$0xff]  ;;  %151 = vmatprep.mubr.msk.bf16.mxu0 %vm162_vm0, %v161_v0 }
   0x2   :  { %v31_v4 = vpack.c.bf16 %v28_v2, %v27_v1  ;;  %v30_v5 = vld [vmem:[%s244_s2 + $0x18] sm:$0xff]  ;;  %v24_v7 = vld [vmem:[%s245_s0] sm:$0xff]  ;;  %v25_v8 = vld [vmem:[%s245_s0 + $0x8] sm:$0xff] }
   0x3   :  { %v32_v6 = vpack.c.bf16 %v30_v5, %v29_v3  ;;  %v26_v9 = vpack.c.bf16 %v25_v8, %v24_v7  ;;  %v140_v10 = vld [vmem:[%s246_s3] ss:$0 sm:$0xff]  ;;  %v86_v16 = vld [vmem:[%s247_s1 + $0x8] sm:$0xff] }
   0x4   :  { %148 = vmatpush3.bf16.msra.mxu0 %v31_v4  ;;  %v85_v12 = vld [vmem:[%s247_s1] sm:$0xff] }
   0x5   :  { %149 = vmatprep.subr.bf16.mxu0 %v161_v0  ;;  %v142_v40 = vld [vmem:[%s248_s4] ss:$0 sm:$0xff] }
   0x6   :  { %v143_v42 = vld [vmem:[%s249_s5] ss:$0 sm:$0xff] }
   0x8   :  { %150 = vmatpush3.bf16.msra.mxu0 %v32_v6 }
   0xb   :  { %152 = vmatmul.mubr.msk.bf16.vlgmr.msra.gmra.mrb[0].mxu0 %vm40_vm1, %v26_v9 }
  0xde   :  { %v78_v11 = vpop.f32.mrb[0].mxu0 }
  0xdf   :  { %v79_v13 = vadd.f32 %v140_v10, %v78_v11  ;;  %v153_v14 = vpop.f32.mrb[1].mxu0 }
  0xe0   :  { %v81_v15 = vpop.f32.mrb[2].mxu0 }
  0xe1   :  { %v82_v17 = vadd.f32 %v140_v10, %v81_v15  ;;  %v154_v18 = vpop.f32.mrb[3].mxu0  ;;  %v87_v19 = vadd.f32 %v85_v12, %v79_v13 }
  0xe3   :  { %v89_v20 = vsel %vm40_vm1, %v87_v19, 0.0  ;;  %v88_v21 = vadd.f32 %v86_v16, %v82_v17 }
  0xe4   :  { %90 = vadd.xlane.f32.xlu0 %v89_v20 }
  0xe5   :  { %v92_v22 = vsel %vm40_vm1, %v88_v21, 0.0 }
  0xe8   :  { %93 = vadd.xlane.f32.xlu0 %v92_v22 }
 0x171   :  { %v91_v23 = vpop.xlane.xlu0 %90 }
 0x172   :  { %v96_v24 = vmul.f32 0.03125, %v91_v23 }
 0x174   :  { %v98_v25 = vsub.f32 %v87_v19, %v96_v24 }
 0x175   :  { %v94_v26 = vpop.xlane.xlu0 %93 }
 0x176   :  { %v97_v27 = vmul.f32 0.03125, %v94_v26  ;;  %v100_v28 = vmul.f32 %v98_v25, %v98_v25 }
 0x178   :  { %v99_v29 = vsub.f32 %v88_v21, %v97_v27  ;;  %v102_v30 = vsel %vm40_vm1, %v100_v28, 0.0 }
 0x179   :  { %103 = vadd.xlane.f32.xlu1 %v102_v30 }
 0x17a   :  { %v101_v31 = vmul.f32 %v99_v29, %v99_v29 }
 0x17c   :  { %v105_v32 = vsel %vm40_vm1, %v101_v31, 0.0 }
 0x17d   :  { %106 = vadd.xlane.f32.xlu1 %v105_v32 }
 0x206   :  { %v104_v33 = vpop.xlane.xlu1 %103 }
 0x207   :  { %v108_v34 = vmul.f32 0.03125, %v104_v33 }
 0x209   :  { %v110_v35 = vadd.f32 1e-05, %v108_v34 }
 0x20a   :  { %v107_v36 = vpop.xlane.xlu1 %106 }
 0x20b   :  { %157 = vrsqrt.f32 %v110_v35  ;;  %v109_v37 = vmul.f32 0.03125, %v107_v36 }
 0x20d   :  { %v111_v38 = vadd.f32 1e-05, %v109_v37 }
 0x20f   :  { %159 = vrsqrt.f32 %v111_v38 }
 0x215   :  { %v158_v39 = vpop.eup %157 }
 0x216   :  { %v114_v41 = vmul.f32 %v158_v39, %v98_v25 }
 0x218   :  { %v123_v43 = vmul.f32 %v142_v40, %v114_v41 }
 0x219   :  { %v160_v44 = vpop.eup %159 }
 0x21a   :  { %v132_v45 = vadd.f32 %v143_v42, %v123_v43  ;;  %v115_v46 = vmul.f32 %v160_v44, %v99_v29 }
 0x21c   :  { %134 = vst.msk [vmem:[%s250_s6] sm:$0xff] %vm40_vm1, %v132_v45  ;;  %v124_v47 = vmul.f32 %v142_v40, %v115_v46 }
 0x21e   :  { %v133_v48 = vadd.f32 %v143_v42, %v124_v47 }
 0x220   :  { %135 = vst.msk [vmem:[%s250_s6 + $0x8] sm:$0xff] %vm40_vm1, %v133_v48 }

// kernel: transformer_forward.41
= control target key start
LH: loop header
LB: loop body
LE: loop exit
PB: predicated region body
PF: predicated region fallthrough
CT: control target
= control target key end

     0   :  { %v1110_v0 = vmov 0.0   ;;  %vm47_vm0 = vcmask 64512   ;;  %vm1111_vm1 = vmmov 0   ;;  %v424_v41 = vlaneseq  ;;  %s1374_s1 = inlined_call_operand.vmem [shape: f32[8,8,8], index: 1, kind: input, shape index: {}]   ;;  %s1375_s0 = inlined_call_operand.vmem [shape: f32[8,8,8], index: 0, kind: input, shape index: {}]   ;;  %s1376_s2 = inlined_call_operand.vmem [shape: f32[8,8,8], index: 2, kind: input, shape index: {}]   ;;  %s1377_s3 = inlined_call_operand.vmem [shape: f32[8,8,8], index: 3, kind: output, shape index: {}]  }
   0x1   :  { %979 = vmatprep.subr.bf16.mxu0 %v1110_v0  ;;  %985 = vmatprep.subr.bf16.mxu1 %v1110_v0  ;;  %v31_v1 = vld [vmem:[%s1374_s1] sm:$0xff]  ;;  %v32_v2 = vld [vmem:[%s1374_s1 + $0x8] sm:$0xff]  ;;  %v33_v5 = vld [vmem:[%s1374_s1 + $0x10] sm:$0xff]  ;;  %v1112_v46 = vmov -1e+30   ;;  %vm537_vm3 = vcmask 1043456  }
   0x2   :  { %v39_v3 = vpack.c.bf16 %v31_v1, %v31_v1  ;;  %v40_v4 = vpack.c.bf16 %v32_v2, %v32_v2  ;;  %981 = vmatprep.mubr.msk.bf16.mxu0 %vm1111_vm1, %v1110_v0  ;;  %987 = vmatprep.mubr.msk.bf16.mxu1 %vm1111_vm1, %v1110_v0  ;;  %v34_v6 = vld [vmem:[%s1374_s1 + $0x18] sm:$0xff]  ;;  %v15_v9 = vld [vmem:[%s1375_s0] sm:$0xff]  ;;  %v16_v10 = vld [vmem:[%s1375_s0 + $0x8] sm:$0xff]  ;;  %v41_v11 = vpack.c.bf16 %v33_v5, %v33_v5  ;;  %v425_v42 = vshrl.u32 %v424_v41, 7 }
   0x3   :  { %v42_v12 = vpack.c.bf16 %v34_v6, %v34_v6  ;;  %v23_v13 = vpack.c.bf16 %v15_v9, %v15_v9  ;;  %v24_v14 = vpack.c.bf16 %v16_v10, %v16_v10  ;;  %v35_v17 = vld [vmem:[%s1374_s1 + $0x20] sm:$0xff]  ;;  %v36_v18 = vld [vmem:[%s1374_s1 + $0x28] sm:$0xff]  ;;  %v17_v19 = vld [vmem:[%s1375_s0 + $0x10] sm:$0xff]  ;;  %v427_v43 = vand.u32 127, %v424_v41 }
   0x4   :  { %v52_v7 = vsel %vm47_vm0, %v39_v3, 0  ;;  %v98_v8 = vsel %vm47_vm0, %v40_v4, 0  ;;  %v144_v15 = vsel %vm47_vm0, %v41_v11, 0  ;;  %v18_v20 = vld [vmem:[%s1375_s0 + $0x18] sm:$0xff]  ;;  %v43_v21 = vpack.c.bf16 %v35_v17, %v35_v17  ;;  %v37_v27 = vld [vmem:[%s1374_s1 + $0x30] sm:$0xff]  ;;  %v19_v29 = vld [vmem:[%s1375_s0 + $0x20] sm:$0xff] }
   0x5   :  { %980 = vmatpush3.bf16.xpose.msra.mxu0 %v52_v7  ;;  %986 = vmatpush3.bf16.xpose.msra.mxu1 %v98_v8  ;;  %v190_v16 = vsel %vm47_vm0, %v42_v12, 0  ;;  %v44_v22 = vpack.c.bf16 %v36_v18, %v36_v18  ;;  %v25_v23 = vpack.c.bf16 %v17_v19, %v17_v19  ;;  %v26_v24 = vpack.c.bf16 %v18_v20, %v18_v20  ;;  %v38_v28 = vld [vmem:[%s1374_s1 + $0x38] sm:$0xff]  ;;  %v20_v30 = vld [vmem:[%s1375_s0 + $0x28] sm:$0xff]  ;;  %v21_v37 = vld [vmem:[%s1375_s0 + $0x30] sm:$0xff] }
   0x6   :  { %991 = vmatprep.subr.bf16.mxu0 %v1110_v0  ;;  %997 = vmatprep.subr.bf16.mxu1 %v1110_v0  ;;  %v236_v25 = vsel %vm47_vm0, %v43_v21, 0  ;;  %v45_v31 = vpack.c.bf16 %v37_v27, %v37_v27  ;;  %v46_v32 = vpack.c.bf16 %v38_v28, %v38_v28  ;;  %v27_v33 = vpack.c.bf16 %v19_v29, %v19_v29  ;;  %v22_v38 = vld [vmem:[%s1375_s0 + $0x38] sm:$0xff] }
   0x7   :  { %v282_v26 = vsel %vm47_vm0, %v44_v22, 0  ;;  %v28_v34 = vpack.c.bf16 %v20_v30, %v20_v30  ;;  %v29_v39 = vpack.c.bf16 %v21_v37, %v21_v37  ;;  %v30_v40 = vpack.c.bf16 %v22_v38, %v22_v38 }
   0x8   :  { %v328_v35 = vsel %vm47_vm0, %v45_v31, 0  ;;  %v374_v36 = vsel %vm47_vm0, %v46_v32, 0  ;;  %vm428_vm2 = vcmp.le.s32.totalorder %v427_v43, %v425_v42  ;;  %v519_v42 = vld [vmem:[%s1376_s2 + $0x8] sm:$0xff] }
   0x9   :  { %v429_v47 = vsel %vm428_vm2, 0.0, %v1112_v46  ;;  %v527_v43 = vpack.c.bf16 %v519_v42, %v519_v42 }
   0xc   :  { %982 = vmatmul.mubr.msk.bf16.vlgmr.msra.gmra.mrb[0].mxu0 %vm47_vm0, %v23_v13  ;;  %988 = vmatmul.mubr.msk.bf16.vlgmr.msra.gmra.mrb[0].mxu1 %vm47_vm0, %v24_v14 }
   0xd   :  { %992 = vmatpush3.bf16.xpose.msra.mxu0 %v144_v15  ;;  %998 = vmatpush3.bf16.xpose.msra.mxu1 %v190_v16 }
   0xe   :  { %993 = vmatprep.mubr.msk.bf16.mxu0 %vm1111_vm1, %v1110_v0  ;;  %999 = vmatprep.mubr.msk.bf16.mxu1 %vm1111_vm1, %v1110_v0 }
   0xf   :  { %1003 = vmatprep.subr.bf16.mxu0 %v1110_v0  ;;  %1009 = vmatprep.subr.bf16.mxu1 %v1110_v0 }
  0x14   :  { %994 = vmatmul.mubr.msk.bf16.vlgmr.msra.gmra.mrb[4].mxu0 %vm47_vm0, %v25_v23  ;;  %1000 = vmatmul.mubr.msk.bf16.vlgmr.msra.gmra.mrb[4].mxu1 %vm47_vm0, %v26_v24 }
  0x15   :  { %1004 = vmatpush3.bf16.xpose.msra.mxu0 %v236_v25  ;;  %1010 = vmatpush3.bf16.xpose.msra.mxu1 %v282_v26 }
  0x16   :  { %1005 = vmatprep.mubr.msk.bf16.mxu0 %vm1111_vm1, %v1110_v0  ;;  %1011 = vmatprep.mubr.msk.bf16.mxu1 %vm1111_vm1, %v1110_v0 }
  0x17   :  { %1015 = vmatprep.subr.bf16.mxu0 %v1110_v0  ;;  %1021 = vmatprep.subr.bf16.mxu1 %v1110_v0 }
  0x1c   :  { %1006 = vmatmul.mubr.msk.bf16.vlgmr.msra.gmra.mrb[8].mxu0 %vm47_vm0, %v27_v33  ;;  %1012 = vmatmul.mubr.msk.bf16.vlgmr.msra.gmra.mrb[8].mxu1 %vm47_vm0, %v28_v34 }
  0x1d   :  { %1016 = vmatpush3.bf16.xpose.msra.mxu0 %v328_v35  ;;  %1022 = vmatpush3.bf16.xpose.msra.mxu1 %v374_v36 }
  0x1e   :  { %1017 = vmatprep.mubr.msk.bf16.mxu0 %vm1111_vm1, %v1110_v0  ;;  %1023 = vmatprep.mubr.msk.bf16.mxu1 %vm1111_vm1, %v1110_v0 }
  0x1f   :  { %1027 = vmatprep.subr.bf16.mxu0 %v1110_v0  ;;  %1033 = vmatprep.subr.bf16.mxu1 %v1110_v0 }
  0x24   :  { %1018 = vmatmul.mubr.msk.bf16.vlgmr.msra.gmra.mrb[12].mxu0 %vm47_vm0, %v29_v39  ;;  %1024 = vmatmul.mubr.msk.bf16.vlgmr.msra.gmra.mrb[12].mxu1 %vm47_vm0, %v30_v40  ;;  %v518_v39 = vld [vmem:[%s1376_s2] sm:$0xff] }
  0x25   :  { %1029 = vmatprep.mubr.msk.bf16.mxu0 %vm1111_vm1, %v1110_v0  ;;  %1035 = vmatprep.mubr.msk.bf16.mxu1 %vm1111_vm1, %v1110_v0  ;;  %v526_v40 = vpack.c.bf16 %v518_v39, %v518_v39 }
  0x27   :  { %v539_v41 = vsel %vm537_vm3, %v526_v40, 0 }
  0x28   :  { %1028 = vmatpush3.bf16.msra.mxu0 %v539_v41 }
  0x29   :  { %1039 = vmatprep.subr.bf16.mxu0 %v1110_v0 }
  0xdf   :  { %v88_v44 = vpop.f32.mrb[0].mxu0  ;;  %v134_v45 = vpop.f32.mrb[0].mxu1 }
  0xe0   :  { %v416_v48 = vmul.f32 0.35355338, %v88_v44  ;;  %v983_v49 = vpop.f32.mrb[1].mxu0  ;;  %v417_v50 = vmul.f32 0.35355338, %v134_v45  ;;  %v989_v51 = vpop.f32.mrb[1].mxu1 }
  0xe1   :  { %v91_v52 = vpop.f32.mrb[2].mxu0  ;;  %v137_v53 = vpop.f32.mrb[2].mxu1  ;;  %v585_v44 = vsel %vm537_vm3, %v527_v43, 0  ;;  %v520_v45 = vld [vmem:[%s1376_s2 + $0x10] sm:$0xff]  ;;  %v522_v51 = vld [vmem:[%s1376_s2 + $0x20] sm:$0xff] }
  0xe2   :  { %v984_v54 = vpop.f32.mrb[3].mxu0  ;;  %v990_v55 = vpop.f32.mrb[3].mxu1  ;;  %v1227_v56 = vadd.f32 %v429_v47, %v416_v48  ;;  %v1229_v57 = vadd.f32 %v429_v47, %v417_v50  ;;  %1034 = vmatpush3.bf16.msra.mxu1 %v585_v44  ;;  %v528_v46 = vpack.c.bf16 %v520_v45, %v520_v45  ;;  %v530_v52 = vpack.c.bf16 %v522_v51, %v522_v51  ;;  %v523_v53 = vld [vmem:[%s1376_s2 + $0x28] sm:$0xff] }
  0xe3   :  { %1045 = vmatprep.subr.bf16.mxu1 %v1110_v0  ;;  %v531_v55 = vpack.c.bf16 %v523_v53, %v523_v53 }
  0xe4   :  { %v438_v58 = vsel %vm47_vm0, %v1227_v56, -inf  ;;  %v441_v59 = vsel %vm47_vm0, %v1229_v57, -inf  ;;  %v631_v48 = vsel %vm537_vm3, %v528_v46, 0  ;;  %v723_v54 = vsel %vm537_vm3, %v530_v52, 0 }
  0xe5   :  { %439 = vmax.xlane.f32.xlu0 %v438_v58  ;;  %v1285_v58 = vsel %vm537_vm3, %v531_v55, 0 }
  0xe7   :  { %v180_v60 = vpop.f32.mrb[4].mxu0  ;;  %v226_v61 = vpop.f32.mrb[4].mxu1 }
  0xe8   :  { %v418_v62 = vmul.f32 0.35355338, %v180_v60  ;;  %v995_v63 = vpop.f32.mrb[5].mxu0  ;;  %v419_v1 = vmul.f32 0.35355338, %v226_v61  ;;  %v1001_v2 = vpop.f32.mrb[5].mxu1 }
  0xe9   :  { %442 = vmax.xlane.f32.xlu0 %v441_v59  ;;  %v183_v3 = vpop.f32.mrb[6].mxu0  ;;  %v229_v4 = vpop.f32.mrb[6].mxu1  ;;  %v524_v59 = vld [vmem:[%s1376_s2 + $0x30] sm:$0xff]  ;;  %v525_v61 = vld [vmem:[%s1376_s2 + $0x38] sm:$0xff] }
  0xea   :  { %v996_v5 = vpop.f32.mrb[7].mxu0  ;;  %v1002_v6 = vpop.f32.mrb[7].mxu1  ;;  %v1235_v7 = vadd.f32 %v429_v47, %v418_v62  ;;  %v1237_v8 = vadd.f32 %v429_v47, %v419_v1  ;;  %v532_v60 = vpack.c.bf16 %v524_v59, %v524_v59  ;;  %v533_v63 = vpack.c.bf16 %v525_v61, %v525_v61 }
  0xec   :  { %v444_v9 = vsel %vm47_vm0, %v1235_v7, -inf  ;;  %v447_v10 = vsel %vm47_vm0, %v1237_v8, -inf  ;;  %v1294_v62 = vsel %vm537_vm3, %v532_v60, 0  ;;  %v1297_v1 = vsel %vm537_vm3, %v533_v63, 0 }
  0xed   :  { %445 = vmax.xlane.f32.xlu1 %v444_v9 }
  0xef   :  { %v272_v11 = vpop.f32.mrb[8].mxu0  ;;  %v318_v12 = vpop.f32.mrb[8].mxu1 }
  0xf0   :  { %v420_v13 = vmul.f32 0.35355338, %v272_v11  ;;  %v421_v14 = vmul.f32 0.35355338, %v318_v12  ;;  %v1007_v15 = vpop.f32.mrb[9].mxu0  ;;  %v1013_v16 = vpop.f32.mrb[9].mxu1 }
  0xf1   :  { %448 = vmax.xlane.f32.xlu1 %v447_v10  ;;  %v275_v17 = vpop.f32.mrb[10].mxu0  ;;  %v321_v18 = vpop.f32.mrb[10].mxu1 }
  0xf2   :  { %v1008_v19 = vpop.f32.mrb[11].mxu0  ;;  %v1014_v20 = vpop.f32.mrb[11].mxu1  ;;  %v1243_v21 = vadd.f32 %v429_v47, %v421_v14  ;;  %v1245_v22 = vadd.f32 %v429_v47, %v420_v13 }
  0xf4   :  { %v453_v23 = vsel %vm47_vm0, %v1243_v21, -inf  ;;  %v450_v24 = vsel %vm47_vm0, %v1245_v22, -inf }
  0xf5   :  { %454 = vmax.xlane.f32.xlu1 %v453_v23  ;;  %451 = vmax.xlane.f32.xlu0 %v450_v24 }
  0xf7   :  { %v364_v25 = vpop.f32.mrb[12].mxu0  ;;  %v410_v26 = vpop.f32.mrb[12].mxu1 }
  0xf8   :  { %v422_v27 = vmul.f32 0.35355338, %v364_v25  ;;  %v423_v28 = vmul.f32 0.35355338, %v410_v26  ;;  %v1019_v29 = vpop.f32.mrb[13].mxu0  ;;  %v1025_v30 = vpop.f32.mrb[13].mxu1 }
  0xf9   :  { %v367_v31 = vpop.f32.mrb[14].mxu0  ;;  %v413_v32 = vpop.f32.mrb[14].mxu1 }
  0xfa   :  { %v1020_v33 = vpop.f32.mrb[15].mxu0  ;;  %v1026_v34 = vpop.f32.mrb[15].mxu1  ;;  %v1251_v35 = vadd.f32 %v429_v47, %v423_v28  ;;  %v1253_v36 = vadd.f32 %v429_v47, %v422_v27  ;;  %v521_v47 = vld [vmem:[%s1376_s2 + $0x18] sm:$0xff] }
  0xfb   :  { %v529_v49 = vpack.c.bf16 %v521_v47, %v521_v47 }
  0xfc   :  { %v459_v37 = vsel %vm47_vm0, %v1251_v35, -inf  ;;  %v456_v38 = vsel %vm47_vm0, %v1253_v36, -inf }
  0xfd   :  { %460 = vmax.xlane.f32.xlu1 %v459_v37  ;;  %457 = vmax.xlane.f32.xlu0 %v456_v38  ;;  %v677_v50 = vsel %vm537_vm3, %v529_v49, 0 }
 0x172   :  { %v440_v2 = vpop.xlane.xlu0 %439 }
 0x173   :  { %v462_v3 = vsub.f32 %v1227_v56, %v440_v2 }
 0x175   :  { %v470_v4 = vmul.f32 1.442695, %v462_v3 }
 0x176   :  { %v443_v5 = vpop.xlane.xlu0 %442 }
 0x177   :  { %1078 = vpow2.f32 %v470_v4  ;;  %v463_v6 = vsub.f32 %v1229_v57, %v443_v5 }
 0x179   :  { %v472_v9 = vmul.f32 1.442695, %v463_v6 }
 0x17a   :  { %v446_v10 = vpop.xlane.xlu1 %445 }
 0x17b   :  { %1080 = vpow2.f32 %v472_v9  ;;  %v464_v11 = vsub.f32 %v1235_v7, %v446_v10 }
 0x17d   :  { %v474_v12 = vmul.f32 1.442695, %v464_v11 }
 0x17e   :  { %v449_v13 = vpop.xlane.xlu1 %448 }
 0x17f   :  { %1082 = vpow2.f32 %v474_v12  ;;  %v465_v14 = vsub.f32 %v1237_v8, %v449_v13 }
 0x181   :  { %v1079_v15 = vpop.eup %1078  ;;  %v476_v16 = vmul.f32 1.442695, %v465_v14 }
 0x182   :  { %v455_v17 = vpop.xlane.xlu1 %454  ;;  %v452_v18 = vpop.xlane.xlu0 %451  ;;  %v486_v56 = vsel %vm47_vm0, %v1079_v15, 0.0  ;;  %v510_v19 = vpack.c.bf16 %v1079_v15, %v1079_v15 }
 0x183   :  { %1084 = vpow2.f32 %v476_v16  ;;  %v467_v57 = vsub.f32 %v1243_v21, %v455_v17  ;;  %v466_v20 = vsub.f32 %v1245_v22, %v452_v18  ;;  %487 = vadd.xlane.f32.xlu0 %v486_v56 }
 0x184   :  { %1030 = vmatmul.mubr.msk.bf16.vlgmr.msra.gmra.mrb[16].mxu0 %vm47_vm0, %v510_v19 }
 0x185   :  { %v1081_v7 = vpop.eup %1080  ;;  %v480_v23 = vmul.f32 1.442695, %v467_v57  ;;  %v478_v24 = vmul.f32 1.442695, %v466_v20  ;;  %1040 = vmatpush3.bf16.msra.mxu0 %v631_v48  ;;  %1041 = vmatprep.mubr.msk.bf16.mxu0 %vm1111_vm1, %v1110_v0 }
 0x186   :  { %v489_v8 = vsel %vm47_vm0, %v1081_v7, 0.0  ;;  %v511_v25 = vpack.c.bf16 %v1081_v7, %v1081_v7  ;;  %1051 = vmatprep.subr.bf16.mxu0 %v1110_v0 }
 0x187   :  { %1086 = vpow2.f32 %v480_v23  ;;  %490 = vadd.xlane.f32.xlu1 %v489_v8 }
 0x188   :  { %1088 = vpow2.f32 %v478_v24  ;;  %1036 = vmatmul.mubr.msk.bf16.vlgmr.msra.gmra.mrb[16].mxu1 %vm47_vm0, %v511_v25 }
 0x189   :  { %v1083_v21 = vpop.eup %1082  ;;  %1046 = vmatpush3.bf16.msra.mxu1 %v677_v50  ;;  %1047 = vmatprep.mubr.msk.bf16.mxu1 %vm1111_vm1, %v1110_v0 }
 0x18a   :  { %v461_v22 = vpop.xlane.xlu1 %460  ;;  %v458_v26 = vpop.xlane.xlu0 %457  ;;  %v492_v27 = vsel %vm47_vm0, %v1083_v21, 0.0  ;;  %v512_v28 = vpack.c.bf16 %v1083_v21, %v1083_v21  ;;  %1057 = vmatprep.subr.bf16.mxu1 %v1110_v0 }
 0x18b   :  { %v469_v29 = vsub.f32 %v1251_v35, %v461_v22  ;;  %v468_v30 = vsub.f32 %v1253_v36, %v458_v26  ;;  %493 = vadd.xlane.f32.xlu0 %v492_v27 }
 0x18c   :  { %1042 = vmatmul.mubr.msk.bf16.vlgmr.msra.gmra.mrb[20].mxu0 %vm47_vm0, %v512_v28 }
 0x18d   :  { %v1085_v31 = vpop.eup %1084  ;;  %v484_v32 = vmul.f32 1.442695, %v469_v29  ;;  %v482_v33 = vmul.f32 1.442695, %v468_v30  ;;  %1052 = vmatpush3.bf16.msra.mxu0 %v723_v54  ;;  %1053 = vmatprep.mubr.msk.bf16.mxu0 %vm1111_vm1, %v1110_v0 }
 0x18e   :  { %v495_v34 = vsel %vm47_vm0, %v1085_v31, 0.0  ;;  %v513_v37 = vpack.c.bf16 %v1085_v31, %v1085_v31  ;;  %1063 = vmatprep.subr.bf16.mxu0 %v1110_v0 }
 0x18f   :  { %1090 = vpow2.f32 %v484_v32  ;;  %496 = vadd.xlane.f32.xlu1 %v495_v34 }
 0x190   :  { %1092 = vpow2.f32 %v482_v33  ;;  %1048 = vmatmul.mubr.msk.bf16.vlgmr.msra.gmra.mrb[20].mxu1 %vm47_vm0, %v513_v37 }
 0x191   :  { %v1087_v35 = vpop.eup %1086  ;;  %1058 = vmatpush3.bf16.msra.mxu1 %v1285_v58  ;;  %1059 = vmatprep.mubr.msk.bf16.mxu1 %vm1111_vm1, %v1110_v0 }
 0x192   :  { %v1089_v36 = vpop.eup %1088  ;;  %v501_v38 = vsel %vm47_vm0, %v1087_v35, 0.0  ;;  %1069 = vmatprep.subr.bf16.mxu1 %v1110_v0  ;;  %v515_v41 = vpack.c.bf16 %v1087_v35, %v1087_v35 }
 0x193   :  { %502 = vadd.xlane.f32.xlu1 %v501_v38  ;;  %v498_v39 = vsel %vm47_vm0, %v1089_v36, 0.0  ;;  %v514_v40 = vpack.c.bf16 %v1089_v36, %v1089_v36 }
 0x194   :  { %499 = vadd.xlane.f32.xlu0 %v498_v39 }
 0x195   :  { %1054 = vmatmul.mubr.msk.bf16.vlgmr.msra.gmra.mrb[24].mxu0 %vm47_vm0, %v514_v40 }
 0x196   :  { %1064 = vmatpush3.bf16.msra.mxu0 %v1294_v62  ;;  %1065 = vmatprep.mubr.msk.bf16.mxu0 %vm1111_vm1, %v1110_v0 }
 0x198   :  { %1060 = vmatmul.mubr.msk.bf16.vlgmr.msra.gmra.mrb[24].mxu1 %vm47_vm0, %v515_v41 }
 0x199   :  { %v1091_v42 = vpop.eup %1090  ;;  %1070 = vmatpush3.bf16.msra.mxu1 %v1297_v1  ;;  %1071 = vmatprep.mubr.msk.bf16.mxu1 %vm1111_vm1, %v1110_v0 }
 0x19a   :  { %v1093_v43 = vpop.eup %1092  ;;  %v507_v44 = vsel %vm47_vm0, %v1091_v42, 0.0  ;;  %v517_v47 = vpack.c.bf16 %v1091_v42, %v1091_v42 }
 0x19b   :  { %508 = vadd.xlane.f32.xlu1 %v507_v44  ;;  %v504_v45 = vsel %vm47_vm0, %v1093_v43, 0.0  ;;  %v516_v46 = vpack.c.bf16 %v1093_v43, %v1093_v43 }
 0x19c   :  { %505 = vadd.xlane.f32.xlu0 %v504_v45 }
 0x19d   :  { %1066 = vmatmul.mubr.msk.bf16.vlgmr.msra.gmra.mrb[28].mxu0 %vm47_vm0, %v516_v46 }
 0x1a0   :  { %1072 = vmatmul.mubr.msk.bf16.vlgmr.msra.gmra.mrb[28].mxu1 %vm47_vm0, %v517_v47 }
 0x210   :  { %v488_v48 = vpop.xlane.xlu0 %487 }
 0x211   :  { %1094 = vrcp.f32 %v488_v48 }
 0x214   :  { %v491_v49 = vpop.xlane.xlu1 %490 }
 0x215   :  { %1096 = vrcp.f32 %v491_v49 }
 0x218   :  { %v494_v50 = vpop.xlane.xlu0 %493 }
 0x219   :  { %1098 = vrcp.f32 %v494_v50 }
 0x21b   :  { %v1095_v51 = vpop.eup %1094 }
 0x21c   :  { %v497_v0 = vpop.xlane.xlu1 %496 }
 0x21d   :  { %1100 = vrcp.f32 %v497_v0 }
 0x21f   :  { %v1097_v59 = vpop.eup %1096 }
 0x220   :  { %v503_v2 = vpop.xlane.xlu1 %502 }
 0x221   :  { %v500_v60 = vpop.xlane.xlu0 %499 }
 0x222   :  { %1102 = vrcp.f32 %v500_v60 }
 0x223   :  { %v1099_v4 = vpop.eup %1098  ;;  %1104 = vrcp.f32 %v503_v2 }
 0x227   :  { %v1101_v12 = vpop.eup %1100 }
 0x228   :  { %v509_v18 = vpop.xlane.xlu1 %508 }
 0x229   :  { %v506_v13 = vpop.xlane.xlu0 %505 }
 0x22a   :  { %1106 = vrcp.f32 %v506_v13 }
 0x22b   :  { %1108 = vrcp.f32 %v509_v18 }
 0x22c   :  { %v1103_v19 = vpop.eup %1102 }
 0x22d   :  { %v1105_v24 = vpop.eup %1104 }
 0x234   :  { %v1107_v28 = vpop.eup %1106 }
 0x235   :  { %v1109_v33 = vpop.eup %1108 }
 0x257   :  { %v575_v52 = vpop.f32.mrb[16].mxu0 }
 0x258   :  { %v911_v53 = vmul.f32 %v1095_v51, %v575_v52  ;;  %v1031_v54 = vpop.f32.mrb[17].mxu0 }
 0x259   :  { %v578_v55 = vpop.f32.mrb[18].mxu0 }
 0x25a   :  { %919 = vst.msk [vmem:[%s1377_s3] sm:$0xff] %vm47_vm0, %v911_v53  ;;  %v1032_v58 = vpop.f32.mrb[19].mxu0 }
 0x25b   :  { %v621_v61 = vpop.f32.mrb[16].mxu1 }
 0x25c   :  { %v912_v62 = vmul.f32 %v1097_v59, %v621_v61  ;;  %v1037_v63 = vpop.f32.mrb[17].mxu1 }
 0x25d   :  { %v624_v1 = vpop.f32.mrb[18].mxu1 }
 0x25e   :  { %920 = vst.msk [vmem:[%s1377_s3 + $0x8] sm:$0xff] %vm47_vm0, %v912_v62  ;;  %v1038_v3 = vpop.f32.mrb[19].mxu1 }
 0x25f   :  { %v667_v5 = vpop.f32.mrb[20].mxu0 }
 0x260   :  { %v913_v6 = vmul.f32 %v1099_v4, %v667_v5  ;;  %v1043_v9 = vpop.f32.mrb[21].mxu0 }
 0x261   :  { %v670_v10 = vpop.f32.mrb[22].mxu0 }
 0x262   :  { %921 = vst.msk [vmem:[%s1377_s3 + $0x10] sm:$0xff] %vm47_vm0, %v913_v6  ;;  %v1044_v11 = vpop.f32.mrb[23].mxu0 }
 0x263   :  { %v713_v14 = vpop.f32.mrb[20].mxu1 }
 0x264   :  { %v914_v15 = vmul.f32 %v1101_v12, %v713_v14  ;;  %v1049_v16 = vpop.f32.mrb[21].mxu1 }
 0x265   :  { %v716_v17 = vpop.f32.mrb[22].mxu1 }
 0x266   :  { %922 = vst.msk [vmem:[%s1377_s3 + $0x18] sm:$0xff] %vm47_vm0, %v914_v15  ;;  %v1050_v56 = vpop.f32.mrb[23].mxu1 }
 0x268   :  { %v759_v57 = vpop.f32.mrb[24].mxu0 }
 0x269   :  { %v915_v20 = vmul.f32 %v1103_v19, %v759_v57  ;;  %v1055_v7 = vpop.f32.mrb[25].mxu0 }
 0x26a   :  { %v762_v23 = vpop.f32.mrb[26].mxu0 }
 0x26b   :  { %923 = vst.msk [vmem:[%s1377_s3 + $0x20] sm:$0xff] %vm47_vm0, %v915_v20  ;;  %v1056_v8 = vpop.f32.mrb[27].mxu0  ;;  %v805_v25 = vpop.f32.mrb[24].mxu1 }
 0x26c   :  { %v916_v21 = vmul.f32 %v1105_v24, %v805_v25  ;;  %v1061_v22 = vpop.f32.mrb[25].mxu1 }
 0x26d   :  { %v808_v26 = vpop.f32.mrb[26].mxu1 }
 0x26e   :  { %924 = vst.msk [vmem:[%s1377_s3 + $0x28] sm:$0xff] %vm47_vm0, %v916_v21  ;;  %v1062_v27 = vpop.f32.mrb[27].mxu1 }
 0x270   :  { %v851_v29 = vpop.f32.mrb[28].mxu0 }
 0x271   :  { %v917_v30 = vmul.f32 %v1107_v28, %v851_v29  ;;  %v1067_v31 = vpop.f32.mrb[29].mxu0 }
 0x272   :  { %v854_v32 = vpop.f32.mrb[30].mxu0 }
 0x273   :  { %925 = vst.msk [vmem:[%s1377_s3 + $0x30] sm:$0xff] %vm47_vm0, %v917_v30  ;;  %v1068_v34 = vpop.f32.mrb[31].mxu0  ;;  %v897_v37 = vpop.f32.mrb[28].mxu1 }
 0x274   :  { %v918_v35 = vmul.f32 %v1109_v33, %v897_v37  ;;  %v1073_v36 = vpop.f32.mrb[29].mxu1 }
 0x275   :  { %v900_v38 = vpop.f32.mrb[30].mxu1 }
 0x276   :  { %926 = vst.msk [vmem:[%s1377_s3 + $0x38] sm:$0xff] %vm47_vm0, %v918_v35  ;;  %v1074_v39 = vpop.f32.mrb[31].mxu1 }

// kernel: transformer_forward.43
= control target key start
LH: loop header
LB: loop body
LE: loop exit
PB: predicated region body
PF: predicated region fallthrough
CT: control target
= control target key end

     0   :  { %v97_v0 = vmov 0.0   ;;  %vm98_vm0 = vmmov 0   ;;  %vm31_vm1 = vcmask 261120   ;;  %s146_s1 = inlined_call_operand.vmem [shape: f32[32,32], index: 1, kind: input, shape index: {}]   ;;  %s147_s0 = inlined_call_operand.vmem [shape: f32[16,32], index: 0, kind: input, shape index: {}]   ;;  %s148_s2 = inlined_call_operand.vmem [shape: f32[1,32], index: 2, kind: input, shape index: {}]   ;;  %s149_s3 = inlined_call_operand.vmem [shape: f32[16,32], index: 3, kind: output, shape index: {}]  }
   0x1   :  { %87 = vmatprep.subr.bf16.mxu0 %v97_v0  ;;  %v18_v1 = vld [vmem:[%s146_s1] sm:$0xff]  ;;  %v19_v2 = vld [vmem:[%s146_s1 + $0x8] sm:$0xff]  ;;  %v20_v3 = vld [vmem:[%s146_s1 + $0x10] sm:$0xff]  ;;  %91 = vmatprep.mubr.msk.bf16.mxu0 %vm98_vm0, %v97_v0 }
   0x2   :  { %v22_v4 = vpack.c.bf16 %v19_v2, %v18_v1  ;;  %v21_v5 = vld [vmem:[%s146_s1 + $0x18] sm:$0xff]  ;;  %v15_v7 = vld [vmem:[%s147_s0] sm:$0xff]  ;;  %v16_v8 = vld [vmem:[%s147_s0 + $0x8] sm:$0xff] }
   0x3   :  { %v23_v6 = vpack.c.bf16 %v21_v5, %v20_v3  ;;  %v17_v9 = vpack.c.bf16 %v16_v8, %v15_v7  ;;  %v82_v10 = vld [vmem:[%s148_s2] ss:$0 sm:$0xff] }
   0x4   :  { %88 = vmatpush3.bf16.msra.mxu0 %v22_v4 }
   0x5   :  { %89 = vmatprep.subr.bf16.mxu0 %v97_v0 }
   0x8   :  { %90 = vmatpush3.bf16.msra.mxu0 %v23_v6 }
   0xb   :  { %92 = vmatmul.mubr.msk.bf16.vlgmr.msra.gmra.mrb[0].mxu0 %vm31_vm1, %v17_v9 }
  0xde   :  { %v69_v11 = vpop.f32.mrb[0].mxu0 }
  0xdf   :  { %v70_v12 = vadd.f32 %v82_v10, %v69_v11  ;;  %v93_v13 = vpop.f32.mrb[1].mxu0 }
  0xe0   :  { %v72_v14 = vpop.f32.mrb[2].mxu0 }
  0xe1   :  { %76 = vst.msk [vmem:[%s149_s3] sm:$0xff] %vm31_vm1, %v70_v12  ;;  %v73_v15 = vadd.f32 %v82_v10, %v72_v14  ;;  %v94_v16 = vpop.f32.mrb[3].mxu0 }
  0xe3   :  { %77 = vst.msk [vmem:[%s149_s3 + $0x8] sm:$0xff] %vm31_vm1, %v73_v15 }

// kernel: transformer_forward.33
= control target key start
LH: loop header
LB: loop body
LE: loop exit
PB: predicated region body
PF: predicated region fallthrough
CT: control target
= control target key end

     0   :  { %v248_v0 = vmov 0.0   ;;  %vm249_vm0 = vmmov 0   ;;  %vm43_vm1 = vcmask 261120   ;;  %vm110_vm2 = vcmask 523264   ;;  %s357_s1 = inlined_call_operand.vmem [shape: f32[32,64], index: 1, kind: input, shape index: {}]   ;;  %s358_s3 = inlined_call_operand.vmem [shape: f32[64,32], index: 3, kind: input, shape index: {}]   ;;  %s359_s0 = inlined_call_operand.vmem [shape: f32[16,32], index: 0, kind: input, shape index: {}]   ;;  %s360_s2 = inlined_call_operand.vmem [shape: f32[1,64], index: 2, kind: input, shape index: {}]   ;;  %s361_s4 = inlined_call_operand.vmem [shape: f32[1,32], index: 4, kind: input, shape index: {}]   ;;  %s362_s5 = inlined_call_operand.vmem [shape: f32[1,32], index: 5, kind: input, shape index: {}]   ;;  %s363_s6 = inlined_call_operand.vmem [shape: f32[1,32], index: 6, kind: input, shape index: {}]   ;;  %s364_s7 = inlined_call_operand.vmem [shape: f32[16,32], index: 7, kind: output, shape index: {}]  }
   0x1   :  { %222 = vmatprep.subr.bf16.mxu0 %v248_v0  ;;  %v30_v1 = vld [vmem:[%s357_s1] sm:$0xff]  ;;  %v31_v2 = vld [vmem:[%s357_s1 + $0x8] sm:$0xff]  ;;  %v32_v3 = vld [vmem:[%s357_s1 + $0x10] sm:$0xff]  ;;  %226 = vmatprep.mubr.msk.bf16.mxu0 %vm249_vm0, %v248_v0 }
   0x2   :  { %v34_v4 = vpack.c.bf16 %v31_v2, %v30_v1  ;;  %v33_v5 = vld [vmem:[%s357_s1 + $0x18] sm:$0xff]  ;;  %230 = vmatprep.subr.bf16.mxu1 %v248_v0  ;;  %238 = vmatprep.mubr.msk.bf16.mxu1 %vm249_vm0, %v248_v0  ;;  %v91_v6 = vld [vmem:[%s358_s3] sm:$0xff]  ;;  %v92_v7 = vld [vmem:[%s358_s3 + $0x8] sm:$0xff] }
   0x3   :  { %v93_v8 = vld [vmem:[%s358_s3 + $0x10] sm:$0xff]  ;;  %v35_v9 = vpack.c.bf16 %v33_v5, %v32_v3  ;;  %v27_v10 = vld [vmem:[%s359_s0] sm:$0xff]  ;;  %v28_v11 = vld [vmem:[%s359_s0 + $0x8] sm:$0xff]  ;;  %v99_v12 = vpack.c.bf16 %v92_v7, %v91_v6 }
   0x4   :  { %223 = vmatpush3.bf16.msra.mxu0 %v34_v4  ;;  %v94_v13 = vld [vmem:[%s358_s3 + $0x18] sm:$0xff]  ;;  %v29_v15 = vpack.c.bf16 %v28_v11, %v27_v10  ;;  %v95_v16 = vld [vmem:[%s358_s3 + $0x20] sm:$0xff]  ;;  %v96_v17 = vld [vmem:[%s358_s3 + $0x28] sm:$0xff] }
   0x5   :  { %224 = vmatprep.subr.bf16.mxu0 %v248_v0  ;;  %231 = vmatpush3.bf16.msra.mxu1 %v99_v12  ;;  %v100_v14 = vpack.c.bf16 %v94_v13, %v93_v8  ;;  %v101_v18 = vpack.c.bf16 %v96_v17, %v95_v16  ;;  %v97_v19 = vld [vmem:[%s358_s3 + $0x30] sm:$0xff]  ;;  %v98_v20 = vld [vmem:[%s358_s3 + $0x38] sm:$0xff]  ;;  %v208_v22 = vld [vmem:[%s360_s2] ss:$0 sm:$0xff] }
   0x6   :  { %232 = vmatprep.subr.bf16.mxu1 %v248_v0  ;;  %v102_v21 = vpack.c.bf16 %v98_v20, %v97_v19  ;;  %v210_v32 = vld [vmem:[%s361_s4] ss:$0 sm:$0xff] }
   0x7   :  { %v212_v60 = vld [vmem:[%s362_s5] ss:$0 sm:$0xff] }
   0x8   :  { %225 = vmatpush3.bf16.msra.mxu0 %v35_v9  ;;  %v213_v62 = vld [vmem:[%s363_s6] ss:$0 sm:$0xff] }
   0x9   :  { %233 = vmatpush3.bf16.msra.mxu1 %v100_v14 }
   0xa   :  { %234 = vmatprep.subr.bf16.mxu1 %v248_v0 }
   0xb   :  { %227 = vmatmul.mubr.msk.bf16.vlgmr.msra.gmra.mrb[0].mxu0 %vm43_vm1, %v29_v15 }
   0xd   :  { %235 = vmatpush3.bf16.msra.mxu1 %v101_v18 }
   0xe   :  { %236 = vmatprep.subr.bf16.mxu1 %v248_v0 }
  0x11   :  { %237 = vmatpush3.bf16.msra.mxu1 %v102_v21 }
  0xde   :  { %v81_v23 = vpop.f32.mrb[0].mxu0 }
  0xdf   :  { %v82_v24 = vadd.f32 %v208_v22, %v81_v23  ;;  %v228_v25 = vpop.f32.mrb[1].mxu0 }
  0xe0   :  { %v84_v26 = vpop.f32.mrb[2].mxu0 }
  0xe1   :  { %v85_v27 = vadd.f32 %v208_v22, %v84_v26  ;;  %v229_v28 = vpop.f32.mrb[3].mxu0  ;;  %v88_v29 = vmax.f32 %v82_v24, 0.0 }
  0xe3   :  { %v89_v30 = vmax.f32 %v85_v27, 0.0 }
  0xe5   :  { %v90_v31 = vpack.c.bf16 %v89_v30, %v88_v29 }
  0xe7   :  { %239 = vmatmul.mubr.msk.bf16.vlgmr.msra.gmra.mrb[0].mxu1 %vm110_vm2, %v90_v31 }
 0x1ba   :  { %v148_v33 = vpop.f32.mrb[0].mxu1 }
 0x1bb   :  { %v149_v34 = vadd.f32 %v210_v32, %v148_v33  ;;  %v240_v35 = vpop.f32.mrb[1].mxu1 }
 0x1bc   :  { %v151_v36 = vpop.f32.mrb[2].mxu1 }
 0x1bd   :  { %v152_v37 = vadd.f32 %v210_v32, %v151_v36  ;;  %v241_v38 = vpop.f32.mrb[3].mxu1  ;;  %v155_v39 = vadd.f32 %v149_v34, %v27_v10 }
 0x1bf   :  { %v157_v40 = vsel %vm43_vm1, %v155_v39, 0.0  ;;  %v156_v41 = vadd.f32 %v152_v37, %v28_v11 }
 0x1c0   :  { %158 = vadd.xlane.f32.xlu0 %v157_v40 }
 0x1c1   :  { %v160_v42 = vsel %vm43_vm1, %v156_v41, 0.0 }
 0x1c4   :  { %161 = vadd.xlane.f32.xlu0 %v160_v42 }
 0x24d   :  { %v159_v43 = vpop.xlane.xlu0 %158 }
 0x24e   :  { %v164_v44 = vmul.f32 0.03125, %v159_v43 }
 0x250   :  { %v166_v45 = vsub.f32 %v155_v39, %v164_v44 }
 0x251   :  { %v162_v46 = vpop.xlane.xlu0 %161 }
 0x252   :  { %v165_v47 = vmul.f32 0.03125, %v162_v46  ;;  %v168_v48 = vmul.f32 %v166_v45, %v166_v45 }
 0x254   :  { %v167_v49 = vsub.f32 %v156_v41, %v165_v47  ;;  %v170_v50 = vsel %vm43_vm1, %v168_v48, 0.0 }
 0x255   :  { %171 = vadd.xlane.f32.xlu1 %v170_v50 }
 0x256   :  { %v169_v51 = vmul.f32 %v167_v49, %v167_v49 }
 0x258   :  { %v173_v52 = vsel %vm43_vm1, %v169_v51, 0.0 }
 0x259   :  { %174 = vadd.xlane.f32.xlu1 %v173_v52 }
 0x2e2   :  { %v172_v53 = vpop.xlane.xlu1 %171 }
 0x2e3   :  { %v176_v54 = vmul.f32 0.03125, %v172_v53 }
 0x2e5   :  { %v178_v55 = vadd.f32 1e-05, %v176_v54 }
 0x2e6   :  { %v175_v56 = vpop.xlane.xlu1 %174 }
 0x2e7   :  { %244 = vrsqrt.f32 %v178_v55  ;;  %v177_v57 = vmul.f32 0.03125, %v175_v56 }
 0x2e9   :  { %v179_v58 = vadd.f32 1e-05, %v177_v57 }
 0x2eb   :  { %246 = vrsqrt.f32 %v179_v58 }
 0x2f1   :  { %v245_v59 = vpop.eup %244 }
 0x2f2   :  { %v182_v61 = vmul.f32 %v245_v59, %v166_v45 }
 0x2f4   :  { %v191_v63 = vmul.f32 %v212_v60, %v182_v61 }
 0x2f5   :  { %v247_v0 = vpop.eup %246 }
 0x2f6   :  { %v200_v1 = vadd.f32 %v213_v62, %v191_v63  ;;  %v183_v2 = vmul.f32 %v247_v0, %v167_v49 }
 0x2f8   :  { %202 = vst.msk [vmem:[%s364_s7] sm:$0xff] %vm43_vm1, %v200_v1  ;;  %v192_v3 = vmul.f32 %v212_v60, %v183_v2 }
 0x2fa   :  { %v201_v4 = vadd.f32 %v213_v62, %v192_v3 }
 0x2fc   :  { %203 = vst.msk [vmem:[%s364_s7 + $0x8] sm:$0xff] %vm43_vm1, %v201_v4 }

// kernel: transformer_forward.31
= control target key start
LH: loop header
LB: loop body
LE: loop exit
PB: predicated region body
PF: predicated region fallthrough
CT: control target
= control target key end

     0   :  { %v1095_v0 = vmov 0.0   ;;  %vm47_vm0 = vcmask 64512   ;;  %vm1096_vm1 = vmmov 0   ;;  %vm523_vm2 = vcmask 1043456   ;;  %s1358_s1 = inlined_call_operand.vmem [shape: f32[8,8,8], index: 1, kind: input, shape index: {}]   ;;  %s1359_s0 = inlined_call_operand.vmem [shape: f32[8,8,8], index: 0, kind: input, shape index: {}]   ;;  %s1360_s2 = inlined_call_operand.vmem [shape: f32[8,8,8], index: 2, kind: input, shape index: {}]   ;;  %s1361_s3 = inlined_call_operand.vmem [shape: f32[8,8,8], index: 3, kind: output, shape index: {}]  }
   0x1   :  { %965 = vmatprep.subr.bf16.mxu0 %v1095_v0  ;;  %971 = vmatprep.subr.bf16.mxu1 %v1095_v0  ;;  %v31_v1 = vld [vmem:[%s1358_s1] sm:$0xff]  ;;  %v32_v2 = vld [vmem:[%s1358_s1 + $0x8] sm:$0xff]  ;;  %v33_v5 = vld [vmem:[%s1358_s1 + $0x10] sm:$0xff] }
   0x2   :  { %v39_v3 = vpack.c.bf16 %v31_v1, %v31_v1  ;;  %v40_v4 = vpack.c.bf16 %v32_v2, %v32_v2  ;;  %967 = vmatprep.mubr.msk.bf16.mxu0 %vm1096_vm1, %v1095_v0  ;;  %973 = vmatprep.mubr.msk.bf16.mxu1 %vm1096_vm1, %v1095_v0  ;;  %v34_v6 = vld [vmem:[%s1358_s1 + $0x18] sm:$0xff]  ;;  %v15_v9 = vld [vmem:[%s1359_s0] sm:$0xff]  ;;  %v16_v10 = vld [vmem:[%s1359_s0 + $0x8] sm:$0xff]  ;;  %v41_v11 = vpack.c.bf16 %v33_v5, %v33_v5 }
   0x3   :  { %v42_v12 = vpack.c.bf16 %v34_v6, %v34_v6  ;;  %v23_v13 = vpack.c.bf16 %v15_v9, %v15_v9  ;;  %v24_v14 = vpack.c.bf16 %v16_v10, %v16_v10  ;;  %v35_v17 = vld [vmem:[%s1358_s1 + $0x20] sm:$0xff]  ;;  %v36_v18 = vld [vmem:[%s1358_s1 + $0x28] sm:$0xff]  ;;  %v17_v19 = vld [vmem:[%s1359_s0 + $0x10] sm:$0xff] }
   0x4   :  { %v52_v7 = vsel %vm47_vm0, %v39_v3, 0  ;;  %v98_v8 = vsel %vm47_vm0, %v40_v4, 0  ;;  %v144_v15 = vsel %vm47_vm0, %v41_v11, 0  ;;  %v18_v20 = vld [vmem:[%s1359_s0 + $0x18] sm:$0xff]  ;;  %v43_v21 = vpack.c.bf16 %v35_v17, %v35_v17  ;;  %v37_v27 = vld [vmem:[%s1358_s1 + $0x30] sm:$0xff]  ;;  %v19_v29 = vld [vmem:[%s1359_s0 + $0x20] sm:$0xff] }
   0x5   :  { %966 = vmatpush3.bf16.xpose.msra.mxu0 %v52_v7  ;;  %972 = vmatpush3.bf16.xpose.msra.mxu1 %v98_v8  ;;  %v190_v16 = vsel %vm47_vm0, %v42_v12, 0  ;;  %v44_v22 = vpack.c.bf16 %v36_v18, %v36_v18  ;;  %v25_v23 = vpack.c.bf16 %v17_v19, %v17_v19  ;;  %v26_v24 = vpack.c.bf16 %v18_v20, %v18_v20  ;;  %v38_v28 = vld [vmem:[%s1358_s1 + $0x38] sm:$0xff]  ;;  %v20_v30 = vld [vmem:[%s1359_s0 + $0x28] sm:$0xff]  ;;  %v21_v37 = vld [vmem:[%s1359_s0 + $0x30] sm:$0xff] }
   0x6   :  { %977 = vmatprep.subr.bf16.mxu0 %v1095_v0  ;;  %983 = vmatprep.subr.bf16.mxu1 %v1095_v0  ;;  %v236_v25 = vsel %vm47_vm0, %v43_v21, 0  ;;  %v45_v31 = vpack.c.bf16 %v37_v27, %v37_v27  ;;  %v46_v32 = vpack.c.bf16 %v38_v28, %v38_v28  ;;  %v27_v33 = vpack.c.bf16 %v19_v29, %v19_v29  ;;  %v22_v38 = vld [vmem:[%s1359_s0 + $0x38] sm:$0xff]  ;;  %v505_v29 = vld [vmem:[%s1360_s2 + $0x8] sm:$0xff] }
   0x7   :  { %v282_v26 = vsel %vm47_vm0, %v44_v22, 0  ;;  %v28_v34 = vpack.c.bf16 %v20_v30, %v20_v30  ;;  %v29_v39 = vpack.c.bf16 %v21_v37, %v21_v37  ;;  %v30_v40 = vpack.c.bf16 %v22_v38, %v22_v38  ;;  %v508_v38 = vld [vmem:[%s1360_s2 + $0x20] sm:$0xff] }
   0x8   :  { %v328_v35 = vsel %vm47_vm0, %v45_v31, 0  ;;  %v374_v36 = vsel %vm47_vm0, %v46_v32, 0  ;;  %v513_v30 = vpack.c.bf16 %v505_v29, %v505_v29  ;;  %v506_v32 = vld [vmem:[%s1360_s2 + $0x10] sm:$0xff] }
   0xa   :  { %v571_v31 = vsel %vm523_vm2, %v513_v30, 0 }
   0xc   :  { %968 = vmatmul.mubr.msk.bf16.vlgmr.msra.gmra.mrb[0].mxu0 %vm47_vm0, %v23_v13  ;;  %974 = vmatmul.mubr.msk.bf16.vlgmr.msra.gmra.mrb[0].mxu1 %vm47_vm0, %v24_v14 }
   0xd   :  { %978 = vmatpush3.bf16.xpose.msra.mxu0 %v144_v15  ;;  %984 = vmatpush3.bf16.xpose.msra.mxu1 %v190_v16 }
   0xe   :  { %979 = vmatprep.mubr.msk.bf16.mxu0 %vm1096_vm1, %v1095_v0  ;;  %985 = vmatprep.mubr.msk.bf16.mxu1 %vm1096_vm1, %v1095_v0 }
   0xf   :  { %989 = vmatprep.subr.bf16.mxu0 %v1095_v0  ;;  %995 = vmatprep.subr.bf16.mxu1 %v1095_v0 }
  0x14   :  { %980 = vmatmul.mubr.msk.bf16.vlgmr.msra.gmra.mrb[4].mxu0 %vm47_vm0, %v25_v23  ;;  %986 = vmatmul.mubr.msk.bf16.vlgmr.msra.gmra.mrb[4].mxu1 %vm47_vm0, %v26_v24 }
  0x15   :  { %990 = vmatpush3.bf16.xpose.msra.mxu0 %v236_v25  ;;  %996 = vmatpush3.bf16.xpose.msra.mxu1 %v282_v26  ;;  %v504_v26 = vld [vmem:[%s1360_s2] sm:$0xff] }
  0x16   :  { %991 = vmatprep.mubr.msk.bf16.mxu0 %vm1096_vm1, %v1095_v0  ;;  %997 = vmatprep.mubr.msk.bf16.mxu1 %vm1096_vm1, %v1095_v0  ;;  %v512_v27 = vpack.c.bf16 %v504_v26, %v504_v26 }
  0x17   :  { %1001 = vmatprep.subr.bf16.mxu0 %v1095_v0  ;;  %1007 = vmatprep.subr.bf16.mxu1 %v1095_v0 }
  0x18   :  { %v525_v28 = vsel %vm523_vm2, %v512_v27, 0 }
  0x1c   :  { %992 = vmatmul.mubr.msk.bf16.vlgmr.msra.gmra.mrb[8].mxu0 %vm47_vm0, %v27_v33  ;;  %998 = vmatmul.mubr.msk.bf16.vlgmr.msra.gmra.mrb[8].mxu1 %vm47_vm0, %v28_v34  ;;  %v514_v33 = vpack.c.bf16 %v506_v32, %v506_v32  ;;  %v507_v34 = vld [vmem:[%s1360_s2 + $0x18] sm:$0xff] }
  0x1d   :  { %1002 = vmatpush3.bf16.xpose.msra.mxu0 %v328_v35  ;;  %1008 = vmatpush3.bf16.xpose.msra.mxu1 %v374_v36  ;;  %v515_v36 = vpack.c.bf16 %v507_v34, %v507_v34 }
  0x1e   :  { %1003 = vmatprep.mubr.msk.bf16.mxu0 %vm1096_vm1, %v1095_v0  ;;  %1009 = vmatprep.mubr.msk.bf16.mxu1 %vm1096_vm1, %v1095_v0  ;;  %v617_v35 = vsel %vm523_vm2, %v514_v33, 0 }
  0x1f   :  { %1013 = vmatprep.subr.bf16.mxu0 %v1095_v0  ;;  %1019 = vmatprep.subr.bf16.mxu1 %v1095_v0  ;;  %v663_v37 = vsel %vm523_vm2, %v515_v36, 0 }
  0x24   :  { %1004 = vmatmul.mubr.msk.bf16.vlgmr.msra.gmra.mrb[12].mxu0 %vm47_vm0, %v29_v39  ;;  %1010 = vmatmul.mubr.msk.bf16.vlgmr.msra.gmra.mrb[12].mxu1 %vm47_vm0, %v30_v40  ;;  %v516_v39 = vpack.c.bf16 %v508_v38, %v508_v38  ;;  %v509_v40 = vld [vmem:[%s1360_s2 + $0x28] sm:$0xff] }
  0x25   :  { %1015 = vmatprep.mubr.msk.bf16.mxu0 %vm1096_vm1, %v1095_v0  ;;  %1021 = vmatprep.mubr.msk.bf16.mxu1 %vm1096_vm1, %v1095_v0 }
  0x26   :  { %1014 = vmatpush3.bf16.msra.mxu0 %v525_v28  ;;  %1020 = vmatpush3.bf16.msra.mxu1 %v571_v31 }
  0x27   :  { %1025 = vmatprep.subr.bf16.mxu0 %v1095_v0  ;;  %1031 = vmatprep.subr.bf16.mxu1 %v1095_v0 }
  0xdf   :  { %v88_v41 = vpop.f32.mrb[0].mxu0  ;;  %v134_v42 = vpop.f32.mrb[0].mxu1 }
  0xe0   :  { %v1211_v43 = vmul.f32 0.35355338, %v88_v41  ;;  %v969_v44 = vpop.f32.mrb[1].mxu0  ;;  %v1213_v45 = vmul.f32 0.35355338, %v134_v42  ;;  %v975_v46 = vpop.f32.mrb[1].mxu1  ;;  %v517_v42 = vpack.c.bf16 %v509_v40, %v509_v40 }
  0xe1   :  { %v91_v47 = vpop.f32.mrb[2].mxu0  ;;  %v137_v48 = vpop.f32.mrb[2].mxu1  ;;  %v709_v41 = vsel %vm523_vm2, %v516_v39, 0  ;;  %v510_v46 = vld [vmem:[%s1360_s2 + $0x30] sm:$0xff] }
  0xe2   :  { %v970_v49 = vpop.f32.mrb[3].mxu0  ;;  %v424_v50 = vsel %vm47_vm0, %v1211_v43, -inf  ;;  %v976_v51 = vpop.f32.mrb[3].mxu1  ;;  %v427_v52 = vsel %vm47_vm0, %v1213_v45, -inf  ;;  %v1269_v44 = vsel %vm523_vm2, %v517_v42, 0  ;;  %v518_v47 = vpack.c.bf16 %v510_v46, %v510_v46  ;;  %v511_v48 = vld [vmem:[%s1360_s2 + $0x38] sm:$0xff] }
  0xe3   :  { %425 = vmax.xlane.f32.xlu0 %v424_v50  ;;  %v519_v50 = vpack.c.bf16 %v511_v48, %v511_v48 }
  0xe4   :  { %v1278_v49 = vsel %vm523_vm2, %v518_v47, 0 }
  0xe5   :  { %v1281_v51 = vsel %vm523_vm2, %v519_v50, 0 }
  0xe7   :  { %428 = vmax.xlane.f32.xlu0 %v427_v52  ;;  %v180_v53 = vpop.f32.mrb[4].mxu0  ;;  %v226_v54 = vpop.f32.mrb[4].mxu1 }
  0xe8   :  { %v1219_v55 = vmul.f32 0.35355338, %v180_v53  ;;  %v981_v56 = vpop.f32.mrb[5].mxu0  ;;  %v1221_v57 = vmul.f32 0.35355338, %v226_v54  ;;  %v987_v58 = vpop.f32.mrb[5].mxu1 }
  0xe9   :  { %v183_v59 = vpop.f32.mrb[6].mxu0  ;;  %v229_v60 = vpop.f32.mrb[6].mxu1 }
  0xea   :  { %v982_v61 = vpop.f32.mrb[7].mxu0  ;;  %v430_v62 = vsel %vm47_vm0, %v1219_v55, -inf  ;;  %v988_v63 = vpop.f32.mrb[7].mxu1  ;;  %v433_v1 = vsel %vm47_vm0, %v1221_v57, -inf }
  0xeb   :  { %431 = vmax.xlane.f32.xlu1 %v430_v62 }
  0xef   :  { %v318_v2 = vpop.f32.mrb[8].mxu1  ;;  %434 = vmax.xlane.f32.xlu1 %v433_v1  ;;  %v272_v3 = vpop.f32.mrb[8].mxu0 }
  0xf0   :  { %v1227_v4 = vmul.f32 0.35355338, %v318_v2  ;;  %v1229_v5 = vmul.f32 0.35355338, %v272_v3  ;;  %v993_v6 = vpop.f32.mrb[9].mxu0  ;;  %v999_v7 = vpop.f32.mrb[9].mxu1 }
  0xf1   :  { %v321_v8 = vpop.f32.mrb[10].mxu1  ;;  %v275_v9 = vpop.f32.mrb[10].mxu0 }
  0xf2   :  { %v439_v10 = vsel %vm47_vm0, %v1227_v4, -inf  ;;  %v436_v11 = vsel %vm47_vm0, %v1229_v5, -inf  ;;  %v994_v12 = vpop.f32.mrb[11].mxu0  ;;  %v1000_v13 = vpop.f32.mrb[11].mxu1 }
  0xf3   :  { %440 = vmax.xlane.f32.xlu1 %v439_v10  ;;  %437 = vmax.xlane.f32.xlu0 %v436_v11 }
  0xf7   :  { %v364_v14 = vpop.f32.mrb[12].mxu0  ;;  %v410_v15 = vpop.f32.mrb[12].mxu1 }
  0xf8   :  { %v1235_v16 = vmul.f32 0.35355338, %v364_v14  ;;  %v1237_v17 = vmul.f32 0.35355338, %v410_v15  ;;  %v1005_v18 = vpop.f32.mrb[13].mxu0  ;;  %v1011_v19 = vpop.f32.mrb[13].mxu1 }
  0xf9   :  { %v413_v20 = vpop.f32.mrb[14].mxu1  ;;  %v367_v21 = vpop.f32.mrb[14].mxu0 }
  0xfa   :  { %v445_v22 = vsel %vm47_vm0, %v1237_v17, -inf  ;;  %v442_v23 = vsel %vm47_vm0, %v1235_v16, -inf  ;;  %v1006_v24 = vpop.f32.mrb[15].mxu0  ;;  %v1012_v25 = vpop.f32.mrb[15].mxu1 }
  0xfb   :  { %446 = vmax.xlane.f32.xlu1 %v445_v22  ;;  %443 = vmax.xlane.f32.xlu0 %v442_v23 }
 0x170   :  { %v426_v52 = vpop.xlane.xlu0 %425 }
 0x171   :  { %v448_v53 = vsub.f32 %v1211_v43, %v426_v52 }
 0x173   :  { %v456_v54 = vmul.f32 1.442695, %v448_v53 }
 0x174   :  { %v429_v56 = vpop.xlane.xlu0 %428 }
 0x175   :  { %1063 = vpow2.f32 %v456_v54  ;;  %v449_v58 = vsub.f32 %v1213_v45, %v429_v56 }
 0x177   :  { %v458_v59 = vmul.f32 1.442695, %v449_v58 }
 0x178   :  { %v432_v60 = vpop.xlane.xlu1 %431 }
 0x179   :  { %1065 = vpow2.f32 %v458_v59  ;;  %v450_v61 = vsub.f32 %v1219_v55, %v432_v60 }
 0x17b   :  { %v460_v62 = vmul.f32 1.442695, %v450_v61 }
 0x17c   :  { %v435_v63 = vpop.xlane.xlu1 %434 }
 0x17d   :  { %1067 = vpow2.f32 %v460_v62  ;;  %v451_v1 = vsub.f32 %v1221_v57, %v435_v63 }
 0x17f   :  { %v1064_v2 = vpop.eup %1063  ;;  %v462_v3 = vmul.f32 1.442695, %v451_v1 }
 0x180   :  { %v441_v6 = vpop.xlane.xlu1 %440  ;;  %v438_v7 = vpop.xlane.xlu0 %437  ;;  %v472_v43 = vsel %vm47_vm0, %v1064_v2, 0.0  ;;  %v496_v8 = vpack.c.bf16 %v1064_v2, %v1064_v2 }
 0x181   :  { %1069 = vpow2.f32 %v462_v3  ;;  %v453_v45 = vsub.f32 %v1227_v4, %v441_v6  ;;  %v452_v9 = vsub.f32 %v1229_v5, %v438_v7  ;;  %473 = vadd.xlane.f32.xlu0 %v472_v43 }
 0x182   :  { %1016 = vmatmul.mubr.msk.bf16.vlgmr.msra.gmra.mrb[16].mxu0 %vm47_vm0, %v496_v8 }
 0x183   :  { %v1066_v55 = vpop.eup %1065  ;;  %v466_v10 = vmul.f32 1.442695, %v453_v45  ;;  %v464_v11 = vmul.f32 1.442695, %v452_v9  ;;  %1026 = vmatpush3.bf16.msra.mxu0 %v617_v35  ;;  %1027 = vmatprep.mubr.msk.bf16.mxu0 %vm1096_vm1, %v1095_v0 }
 0x184   :  { %v475_v57 = vsel %vm47_vm0, %v1066_v55, 0.0  ;;  %v497_v12 = vpack.c.bf16 %v1066_v55, %v1066_v55  ;;  %1037 = vmatprep.subr.bf16.mxu0 %v1095_v0 }
 0x185   :  { %1071 = vpow2.f32 %v466_v10  ;;  %476 = vadd.xlane.f32.xlu1 %v475_v57 }
 0x186   :  { %1073 = vpow2.f32 %v464_v11  ;;  %1022 = vmatmul.mubr.msk.bf16.vlgmr.msra.gmra.mrb[16].mxu1 %vm47_vm0, %v497_v12 }
 0x187   :  { %v1068_v4 = vpop.eup %1067  ;;  %1032 = vmatpush3.bf16.msra.mxu1 %v663_v37  ;;  %1033 = vmatprep.mubr.msk.bf16.mxu1 %vm1096_vm1, %v1095_v0 }
 0x188   :  { %v447_v5 = vpop.xlane.xlu1 %446  ;;  %v444_v13 = vpop.xlane.xlu0 %443  ;;  %v478_v14 = vsel %vm47_vm0, %v1068_v4, 0.0  ;;  %v498_v15 = vpack.c.bf16 %v1068_v4, %v1068_v4  ;;  %1043 = vmatprep.subr.bf16.mxu1 %v1095_v0 }
 0x189   :  { %v455_v18 = vsub.f32 %v1237_v17, %v447_v5  ;;  %v454_v19 = vsub.f32 %v1235_v16, %v444_v13  ;;  %479 = vadd.xlane.f32.xlu0 %v478_v14 }
 0x18a   :  { %1028 = vmatmul.mubr.msk.bf16.vlgmr.msra.gmra.mrb[20].mxu0 %vm47_vm0, %v498_v15 }
 0x18b   :  { %v1070_v20 = vpop.eup %1069  ;;  %v470_v21 = vmul.f32 1.442695, %v455_v18  ;;  %v468_v22 = vmul.f32 1.442695, %v454_v19  ;;  %1038 = vmatpush3.bf16.msra.mxu0 %v709_v41  ;;  %1039 = vmatprep.mubr.msk.bf16.mxu0 %vm1096_vm1, %v1095_v0 }
 0x18c   :  { %v481_v23 = vsel %vm47_vm0, %v1070_v20, 0.0  ;;  %v499_v24 = vpack.c.bf16 %v1070_v20, %v1070_v20  ;;  %1049 = vmatprep.subr.bf16.mxu0 %v1095_v0 }
 0x18d   :  { %1075 = vpow2.f32 %v470_v21  ;;  %482 = vadd.xlane.f32.xlu1 %v481_v23 }
 0x18e   :  { %1077 = vpow2.f32 %v468_v22  ;;  %1034 = vmatmul.mubr.msk.bf16.vlgmr.msra.gmra.mrb[20].mxu1 %vm47_vm0, %v499_v24 }
 0x18f   :  { %v1072_v16 = vpop.eup %1071  ;;  %1044 = vmatpush3.bf16.msra.mxu1 %v1269_v44  ;;  %1045 = vmatprep.mubr.msk.bf16.mxu1 %vm1096_vm1, %v1095_v0 }
 0x190   :  { %v1074_v17 = vpop.eup %1073  ;;  %v487_v25 = vsel %vm47_vm0, %v1072_v16, 0.0  ;;  %1055 = vmatprep.subr.bf16.mxu1 %v1095_v0  ;;  %v501_v28 = vpack.c.bf16 %v1072_v16, %v1072_v16 }
 0x191   :  { %488 = vadd.xlane.f32.xlu1 %v487_v25  ;;  %v484_v26 = vsel %vm47_vm0, %v1074_v17, 0.0  ;;  %v500_v27 = vpack.c.bf16 %v1074_v17, %v1074_v17 }
 0x192   :  { %485 = vadd.xlane.f32.xlu0 %v484_v26 }
 0x193   :  { %1040 = vmatmul.mubr.msk.bf16.vlgmr.msra.gmra.mrb[24].mxu0 %vm47_vm0, %v500_v27 }
 0x194   :  { %1050 = vmatpush3.bf16.msra.mxu0 %v1278_v49  ;;  %1051 = vmatprep.mubr.msk.bf16.mxu0 %vm1096_vm1, %v1095_v0 }
 0x196   :  { %1046 = vmatmul.mubr.msk.bf16.vlgmr.msra.gmra.mrb[24].mxu1 %vm47_vm0, %v501_v28 }
 0x197   :  { %v1076_v29 = vpop.eup %1075  ;;  %1056 = vmatpush3.bf16.msra.mxu1 %v1281_v51  ;;  %1057 = vmatprep.mubr.msk.bf16.mxu1 %vm1096_vm1, %v1095_v0 }
 0x198   :  { %v1078_v30 = vpop.eup %1077  ;;  %v493_v31 = vsel %vm47_vm0, %v1076_v29, 0.0  ;;  %v503_v34 = vpack.c.bf16 %v1076_v29, %v1076_v29 }
 0x199   :  { %494 = vadd.xlane.f32.xlu1 %v493_v31  ;;  %v490_v32 = vsel %vm47_vm0, %v1078_v30, 0.0  ;;  %v502_v33 = vpack.c.bf16 %v1078_v30, %v1078_v30 }
 0x19a   :  { %491 = vadd.xlane.f32.xlu0 %v490_v32 }
 0x19b   :  { %1052 = vmatmul.mubr.msk.bf16.vlgmr.msra.gmra.mrb[28].mxu0 %vm47_vm0, %v502_v33 }
 0x19e   :  { %1058 = vmatmul.mubr.msk.bf16.vlgmr.msra.gmra.mrb[28].mxu1 %vm47_vm0, %v503_v34 }
 0x20e   :  { %v474_v35 = vpop.xlane.xlu0 %473 }
 0x20f   :  { %1079 = vrcp.f32 %v474_v35 }
 0x212   :  { %v477_v36 = vpop.xlane.xlu1 %476 }
 0x213   :  { %1081 = vrcp.f32 %v477_v36 }
 0x216   :  { %v480_v37 = vpop.xlane.xlu0 %479 }
 0x217   :  { %1083 = vrcp.f32 %v480_v37 }
 0x219   :  { %v1080_v38 = vpop.eup %1079 }
 0x21a   :  { %v483_v0 = vpop.xlane.xlu1 %482 }
 0x21b   :  { %1085 = vrcp.f32 %v483_v0 }
 0x21d   :  { %v1082_v46 = vpop.eup %1081 }
 0x21e   :  { %v489_v52 = vpop.xlane.xlu1 %488 }
 0x21f   :  { %v486_v47 = vpop.xlane.xlu0 %485 }
 0x220   :  { %1087 = vrcp.f32 %v486_v47 }
 0x221   :  { %v1084_v54 = vpop.eup %1083  ;;  %1089 = vrcp.f32 %v489_v52 }
 0x225   :  { %v1086_v62 = vpop.eup %1085 }
 0x226   :  { %v495_v7 = vpop.xlane.xlu1 %494 }
 0x227   :  { %v492_v63 = vpop.xlane.xlu0 %491 }
 0x228   :  { %1091 = vrcp.f32 %v492_v63 }
 0x229   :  { %1093 = vrcp.f32 %v495_v7 }
 0x22a   :  { %v1088_v8 = vpop.eup %1087 }
 0x22b   :  { %v1090_v11 = vpop.eup %1089 }
 0x232   :  { %v1092_v15 = vpop.eup %1091 }
 0x233   :  { %v1094_v22 = vpop.eup %1093 }
 0x255   :  { %v561_v39 = vpop.f32.mrb[16].mxu0 }
 0x256   :  { %v897_v40 = vmul.f32 %v1080_v38, %v561_v39  ;;  %v1017_v41 = vpop.f32.mrb[17].mxu0 }
 0x257   :  { %v564_v42 = vpop.f32.mrb[18].mxu0 }
 0x258   :  { %905 = vst.msk [vmem:[%s1361_s3] sm:$0xff] %vm47_vm0, %v897_v40  ;;  %v1018_v44 = vpop.f32.mrb[19].mxu0 }
 0x259   :  { %v607_v48 = vpop.f32.mrb[16].mxu1 }
 0x25a   :  { %v898_v49 = vmul.f32 %v1082_v46, %v607_v48  ;;  %v1023_v50 = vpop.f32.mrb[17].mxu1 }
 0x25b   :  { %v610_v51 = vpop.f32.mrb[18].mxu1 }
 0x25c   :  { %906 = vst.msk [vmem:[%s1361_s3 + $0x8] sm:$0xff] %vm47_vm0, %v898_v49  ;;  %v1024_v53 = vpop.f32.mrb[19].mxu1 }
 0x25d   :  { %v653_v56 = vpop.f32.mrb[20].mxu0 }
 0x25e   :  { %v899_v58 = vmul.f32 %v1084_v54, %v653_v56  ;;  %v1029_v59 = vpop.f32.mrb[21].mxu0 }
 0x25f   :  { %v656_v60 = vpop.f32.mrb[22].mxu0 }
 0x260   :  { %907 = vst.msk [vmem:[%s1361_s3 + $0x10] sm:$0xff] %vm47_vm0, %v899_v58  ;;  %v1030_v61 = vpop.f32.mrb[23].mxu0 }
 0x261   :  { %v699_v1 = vpop.f32.mrb[20].mxu1 }
 0x262   :  { %v900_v2 = vmul.f32 %v1086_v62, %v699_v1  ;;  %v1035_v3 = vpop.f32.mrb[21].mxu1 }
 0x263   :  { %v702_v6 = vpop.f32.mrb[22].mxu1 }
 0x264   :  { %908 = vst.msk [vmem:[%s1361_s3 + $0x18] sm:$0xff] %vm47_vm0, %v900_v2  ;;  %v1036_v43 = vpop.f32.mrb[23].mxu1 }
 0x266   :  { %v745_v45 = vpop.f32.mrb[24].mxu0 }
 0x267   :  { %v901_v9 = vmul.f32 %v1088_v8, %v745_v45  ;;  %v1041_v55 = vpop.f32.mrb[25].mxu0 }
 0x268   :  { %v748_v10 = vpop.f32.mrb[26].mxu0 }
 0x269   :  { %909 = vst.msk [vmem:[%s1361_s3 + $0x20] sm:$0xff] %vm47_vm0, %v901_v9  ;;  %v1042_v57 = vpop.f32.mrb[27].mxu0  ;;  %v791_v12 = vpop.f32.mrb[24].mxu1 }
 0x26a   :  { %v902_v4 = vmul.f32 %v1090_v11, %v791_v12  ;;  %v1047_v5 = vpop.f32.mrb[25].mxu1 }
 0x26b   :  { %v794_v13 = vpop.f32.mrb[26].mxu1 }
 0x26c   :  { %910 = vst.msk [vmem:[%s1361_s3 + $0x28] sm:$0xff] %vm47_vm0, %v902_v4  ;;  %v1048_v14 = vpop.f32.mrb[27].mxu1 }
 0x26e   :  { %v837_v18 = vpop.f32.mrb[28].mxu0 }
 0x26f   :  { %v903_v19 = vmul.f32 %v1092_v15, %v837_v18  ;;  %v1053_v20 = vpop.f32.mrb[29].mxu0 }
 0x270   :  { %v840_v21 = vpop.f32.mrb[30].mxu0 }
 0x271   :  { %911 = vst.msk [vmem:[%s1361_s3 + $0x30] sm:$0xff] %vm47_vm0, %v903_v19  ;;  %v1054_v23 = vpop.f32.mrb[31].mxu0  ;;  %v883_v24 = vpop.f32.mrb[28].mxu1 }
 0x272   :  { %v904_v16 = vmul.f32 %v1094_v22, %v883_v24  ;;  %v1059_v17 = vpop.f32.mrb[29].mxu1 }
 0x273   :  { %v886_v25 = vpop.f32.mrb[30].mxu1 }
 0x274   :  { %912 = vst.msk [vmem:[%s1361_s3 + $0x38] sm:$0xff] %vm47_vm0, %v904_v16  ;;  %v1060_v26 = vpop.f32.mrb[31].mxu1 }

// kernel: transformer_forward.44
= control target key start
LH: loop header
LB: loop body
LE: loop exit
PB: predicated region body
PF: predicated region fallthrough
CT: control target
= control target key end

     0   :  { %v98_v0 = vmov 0.0   ;;  %vm99_vm0 = vmmov 0   ;;  %vm31_vm1 = vcmask 261120   ;;  %vm76_vm2 = vcmask 523264   ;;  %s147_s1 = inlined_call_operand.vmem [shape: f32[32,64], index: 1, kind: input, shape index: {}]   ;;  %s148_s0 = inlined_call_operand.vmem [shape: f32[16,32], index: 0, kind: input, shape index: {}]   ;;  %s149_s2 = inlined_call_operand.vmem [shape: f32[1,64], index: 2, kind: input, shape index: {}]   ;;  %s150_s3 = inlined_call_operand.vmem [shape: f32[16,64], index: 3, kind: output, shape index: {}]  }
   0x1   :  { %88 = vmatprep.subr.bf16.mxu0 %v98_v0  ;;  %v18_v1 = vld [vmem:[%s147_s1] sm:$0xff]  ;;  %v19_v2 = vld [vmem:[%s147_s1 + $0x8] sm:$0xff]  ;;  %v20_v3 = vld [vmem:[%s147_s1 + $0x10] sm:$0xff]  ;;  %92 = vmatprep.mubr.msk.bf16.mxu0 %vm99_vm0, %v98_v0 }
   0x2   :  { %v22_v4 = vpack.c.bf16 %v19_v2, %v18_v1  ;;  %v21_v5 = vld [vmem:[%s147_s1 + $0x18] sm:$0xff]  ;;  %v15_v7 = vld [vmem:[%s148_s0] sm:$0xff]  ;;  %v16_v8 = vld [vmem:[%s148_s0 + $0x8] sm:$0xff] }
   0x3   :  { %v23_v6 = vpack.c.bf16 %v21_v5, %v20_v3  ;;  %v17_v9 = vpack.c.bf16 %v16_v8, %v15_v7  ;;  %v83_v10 = vld [vmem:[%s149_s2] ss:$0 sm:$0xff] }
   0x4   :  { %89 = vmatpush3.bf16.msra.mxu0 %v22_v4 }
   0x5   :  { %90 = vmatprep.subr.bf16.mxu0 %v98_v0 }
   0x8   :  { %91 = vmatpush3.bf16.msra.mxu0 %v23_v6 }
   0xb   :  { %93 = vmatmul.mubr.msk.bf16.vlgmr.msra.gmra.mrb[0].mxu0 %vm31_vm1, %v17_v9 }
  0xde   :  { %v69_v11 = vpop.f32.mrb[0].mxu0 }
  0xdf   :  { %v70_v12 = vadd.f32 %v83_v10, %v69_v11  ;;  %v94_v13 = vpop.f32.mrb[1].mxu0 }
  0xe0   :  { %v72_v14 = vpop.f32.mrb[2].mxu0 }
  0xe1   :  { %77 = vst.msk [vmem:[%s150_s3] sm:$0xff] %vm76_vm2, %v70_v12  ;;  %v73_v15 = vadd.f32 %v83_v10, %v72_v14  ;;  %v95_v16 = vpop.f32.mrb[3].mxu0 }
  0xe3   :  { %78 = vst.msk [vmem:[%s150_s3 + $0x8] sm:$0xff] %vm76_vm2, %v73_v15 }

// kernel: transformer_forward.38
= control target key start
LH: loop header
LB: loop body
LE: loop exit
PB: predicated region body
PF: predicated region fallthrough
CT: control target
= control target key end

     0   :  { %vm16_vm0 = vcmask 261120   ;;  %s118_s0 = inlined_call_operand.vmem [shape: f32[16,32], index: 0, kind: input, shape index: {}]   ;;  %s119_s1 = inlined_call_operand.vmem [shape: f32[1,32], index: 1, kind: input, shape index: {}]   ;;  %s120_s2 = inlined_call_operand.vmem [shape: f32[1,32], index: 2, kind: input, shape index: {}]   ;;  %s121_s3 = inlined_call_operand.vmem [shape: f32[16,32], index: 3, kind: output, shape index: {}]  }
   0x1   :  { %v14_v0 = vld [vmem:[%s118_s0] sm:$0xff]  ;;  %v15_v1 = vld [vmem:[%s118_s0 + $0x8] sm:$0xff] }
   0x2   :  { %v17_v2 = vsel %vm16_vm0, %v14_v0, 0.0  ;;  %v20_v3 = vsel %vm16_vm0, %v15_v1, 0.0  ;;  %v68_v21 = vld [vmem:[%s119_s1] ss:$0 sm:$0xff] }
   0x3   :  { %18 = vadd.xlane.f32.xlu0 %v17_v2  ;;  %v69_v23 = vld [vmem:[%s120_s2] ss:$0 sm:$0xff] }
   0x7   :  { %21 = vadd.xlane.f32.xlu0 %v20_v3 }
  0x90   :  { %v19_v4 = vpop.xlane.xlu0 %18 }
  0x91   :  { %v24_v5 = vmul.f32 0.03125, %v19_v4 }
  0x93   :  { %v26_v6 = vsub.f32 %v14_v0, %v24_v5 }
  0x94   :  { %v22_v7 = vpop.xlane.xlu0 %21 }
  0x95   :  { %v25_v8 = vmul.f32 0.03125, %v22_v7  ;;  %v28_v9 = vmul.f32 %v26_v6, %v26_v6 }
  0x97   :  { %v27_v10 = vsub.f32 %v15_v1, %v25_v8  ;;  %v30_v11 = vsel %vm16_vm0, %v28_v9, 0.0 }
  0x98   :  { %31 = vadd.xlane.f32.xlu1 %v30_v11 }
  0x99   :  { %v29_v12 = vmul.f32 %v27_v10, %v27_v10 }
  0x9b   :  { %v33_v13 = vsel %vm16_vm0, %v29_v12, 0.0 }
  0x9c   :  { %34 = vadd.xlane.f32.xlu1 %v33_v13 }
 0x125   :  { %v32_v14 = vpop.xlane.xlu1 %31 }
 0x126   :  { %v36_v15 = vmul.f32 0.03125, %v32_v14 }
 0x128   :  { %v38_v16 = vadd.f32 1e-05, %v36_v15 }
 0x129   :  { %v35_v17 = vpop.xlane.xlu1 %34 }
 0x12a   :  { %70 = vrsqrt.f32 %v38_v16  ;;  %v37_v18 = vmul.f32 0.03125, %v35_v17 }
 0x12c   :  { %v39_v19 = vadd.f32 1e-05, %v37_v18 }
 0x12e   :  { %72 = vrsqrt.f32 %v39_v19 }
 0x134   :  { %v71_v20 = vpop.eup %70 }
 0x135   :  { %v42_v22 = vmul.f32 %v71_v20, %v26_v6 }
 0x137   :  { %v51_v24 = vmul.f32 %v68_v21, %v42_v22 }
 0x138   :  { %v73_v25 = vpop.eup %72 }
 0x139   :  { %v60_v26 = vadd.f32 %v69_v23, %v51_v24  ;;  %v43_v27 = vmul.f32 %v73_v25, %v27_v10 }
 0x13b   :  { %62 = vst.msk [vmem:[%s121_s3] sm:$0xff] %vm16_vm0, %v60_v26  ;;  %v52_v28 = vmul.f32 %v68_v21, %v43_v27 }
 0x13d   :  { %v61_v29 = vadd.f32 %v69_v23, %v52_v28 }
 0x13f   :  { %63 = vst.msk [vmem:[%s121_s3 + $0x8] sm:$0xff] %vm16_vm0, %v61_v29 }

// kernel: transformer_forward.57
= control target key start
LH: loop header
LB: loop body
LE: loop exit
PB: predicated region body
PF: predicated region fallthrough
CT: control target
= control target key end

     0   :  { %v137_v3 = vmov 0.0   ;;  %vm138_vm0 = vmmov 0   ;;  %s195_s0 = inlined_call_operand.vmem [shape: f32[16,32], index: 0, kind: input, shape index: {}]   ;;  %s196_s1 = inlined_call_operand.vmem [shape: f32[32,128], index: 1, kind: input, shape index: {}]   ;;  %s197_s2 = inlined_call_operand.vmem [shape: f32[1,128], index: 2, kind: input, shape index: {}]   ;;  %s198_s3 = inlined_call_operand.hbm [shape: f32[16,128], index: 3, kind: output, shape index: {}]  }
   0x1   :  { %v19_v0 = vld [vmem:[%s196_s1] sm:$0xff]  ;;  %v20_v1 = vld [vmem:[%s196_s1 + $0x8] sm:$0xff]  ;;  %v21_v2 = vld [vmem:[%s196_s1 + $0x10] sm:$0xff]  ;;  %100 = vmatprep.subr.bf16.mxu0 %v137_v3  ;;  %104 = vmatprep.mubr.msk.bf16.mxu0 %vm138_vm0, %v137_v3 }
   0x2   :  { %v23_v4 = vpack.c.bf16 %v20_v1, %v19_v0  ;;  %v22_v5 = vld [vmem:[%s196_s1 + $0x18] sm:$0xff] }
   0x3   :  { %8 = vsyncpa [#allocation3], 0  ;;  %v24_v6 = vpack.c.bf16 %v22_v5, %v21_v2  ;;  %v16_v7 = vld [vmem:[%s195_s0] sm:$0xff]  ;;  %v17_v8 = vld [vmem:[%s195_s0 + $0x8] sm:$0xff]  ;;  %vm32_vm1 = vcmask 261120   ;;  %s139_s25 = smov [#allocation2]  }
   0x4   :  { %101 = vmatpush3.bf16.msra.mxu0 %v23_v4  ;;  %v18_v9 = vpack.c.bf16 %v17_v8, %v16_v7  ;;  %v95_v10 = vld [vmem:[%s197_s2] ss:$0 sm:$0xff]  ;;  %s84_s26 = sshll.u32 %s139_s25, 4  ;;  %s85_s26 = int_to_ptr.vmem [resolvable:$true] %s84_s26 }
   0x5   :  { %102 = vmatprep.subr.bf16.mxu0 %v137_v3  ;;  %s113_s0 = scalar_lea.vmem %s85_s26, 256  ;;  %p118_p1 = scmp.lt.s32.totalorder %s85_s26, %s85_s26 }
   0x6   :  { %p114_p0 = scmp.ne.s32.totalorder %s85_s26, %s113_s0  ;;  %p119_p2 = scmp.lt.s32.totalorder %s113_s0, %s113_s0 }
   0x8   :  { %103 = vmatpush3.bf16.msra.mxu0 %v24_v6  ;;  %p120_p3 = por %p119_p2, %p118_p1 }
   0xa   :  { %p121_p4 = pnand %p120_p3, %p114_p0 }
   0xb   :  { %105 = vmatmul.mubr.msk.bf16.vlgmr.msra.gmra.mrb[0].mxu0 %vm32_vm1, %v18_v9 }
  0xde   :  { %v70_v11 = vpop.f32.mrb[0].mxu0 }
  0xdf   :  { %v71_v12 = vadd.f32 %v95_v10, %v70_v11  ;;  %v106_v13 = vpop.f32.mrb[1].mxu0 }
  0xe0   :  { %v73_v14 = vpop.f32.mrb[2].mxu0 }
  0xe1   :  { %77 = vst [vmem:[#allocation2] sm:$0xff] %v71_v12  ;;  %v74_v15 = vadd.f32 %v95_v10, %v73_v14  ;;  %v107_v16 = vpop.f32.mrb[3].mxu0 }
  0xe3   :  { %78 = vst [vmem:[#allocation2 + $0x8] sm:$0xff] %v74_v15 }
  0xe4   :  { %124 = shalt.err (!%p121_p4)
}
  0xe5   :  { %s125_s28 = scalar_lea.hbm %s198_s3, 256 }
  0xe6   :  { %p126_p5 = scmp.ne.s32.totalorder %s198_s3, %s125_s28  ;;  %p129_p6 = scmp.lt.u32.totalorder %s125_s28, %s198_s3 }
  0xe8   :  { %p131_p7 = pnand %p129_p6, %p126_p5 }
  0xea   :  { %134 = shalt.err (!%p131_p7)
}
  0xeb   :  { %s140_s6 = smov 128   ;;  %s141_s7 = smov 8  }
  0xec   :  { %90 = dma.vmem_to_hbm [thread:$0]  %s85_s26, 256, %s198_s3, [#allocation3], %s140_s6, %s140_s6, %s141_s7  }
  0xed   :  { %135 = dma.done.wait [#allocation3], 256  }
  0xee   :  { %136 = vsyncadd [#allocation3], 4294967040 }
  0xef   :  { %94 = vsyncpa [#allocation3], 1 }

</bundles_post_ra>
